<compile_context>
chip_gen: v5e
topology: v5e:2x2
jax: 0.10.0
libtpu: 0.0.40
codegen_flags: <defaults>
</compile_context>

<pallas_src>
import math

import jax
import jax.numpy as jnp
from jax import lax
from jax.experimental import pallas as pl
from jax.experimental.pallas import tpu as pltpu


def _softplus(x):
    # numerically-stable softplus written with ops that lower cleanly in Mosaic
    return jnp.maximum(x, 0.0) + jnp.log(1.0 + jnp.exp(-jnp.abs(x)))


# ---------------------------------------------------------------------------
# Main kernel: upscale Linear -> N wavenet cells (causal dilated conv + gated
# activation + 1x1 conv, residual + skip) -> forecast Linear+ReLU -> packed
# [loc | softplus(scale)+1e-6] head on the last out_seq timesteps.
# One grid step processes Bt batch elements as one [Bt*seq, C] matrix.
# ---------------------------------------------------------------------------
def _make_wavenet_kernel(Bt, seq, H, N, K, d_output, out_seq, compute_dtype):
    max_shift = (K - 1) * 2 ** (N - 1)
    pad = -(-max_shift // 8) * 8          # sublane-aligned causal left pad

    def kernel(x_ref, wup_ref, bup_ref,
               wdfg_ref, bdfg_ref, whs_ref, bhs_ref,
               wf_ref, bf_ref, wls_ref, bls_ref,
               out_ref, hpad_ref):
        M = Bt * seq
        x = x_ref[...].reshape(M, -1)                            # bf16 [M, d_in]
        h = jnp.dot(x, wup_ref[...],
                    preferred_element_type=jnp.float32) + bup_ref[...]
        skip = jnp.zeros((M, H), jnp.float32)

        # zero the causal left-pad region once per grid step; it stays zero.
        if pad > 0:
            hpad_ref[:, :pad, :] = jnp.zeros((Bt, pad, H), compute_dtype)

        # TODO(synk): for large N (>~8) convert this static unroll to
        # lax.fori_loop (weights indexed dynamically, taps via pl.ds) to bound
        # vreg live ranges; static unroll is fine for the small N used here.
        for i in range(N):
            dil = 2 ** i
            h3 = h.astype(compute_dtype).reshape(Bt, seq, H)     # bf16
            if K > 1:
                hpad_ref[:, pad:, :] = h3                        # stored once
            taps = []
            for k in range(K):
                s = (K - 1 - k) * dil                            # causal shift
                # slice the Ref directly: loads only the seq rows this tap needs
                taps.append(h3 if s == 0
                            else hpad_ref[:, pad - s:pad - s + seq, :])
            hs = taps[0] if K == 1 else jnp.concatenate(taps, axis=-1)
            hs = hs.reshape(M, K * H)                            # bf16 fused taps
            # ONE 2H-wide matmul for filter|gate (fills the 256-wide MXU)
            fg = jnp.dot(hs, wdfg_ref[i],
                         preferred_element_type=jnp.float32) + bdfg_ref[i]
            # aligned lane split when H % 128 == 0 (true for the demo H=128)
            z = (jnp.tanh(fg[:, :H]) * jax.nn.sigmoid(fg[:, H:])
                 ).astype(compute_dtype)
            # ONE 2H-wide matmul for residual|skip
            rs = jnp.dot(z, whs_ref[i],
                         preferred_element_type=jnp.float32) + bhs_ref[i]
            h = h + rs[:, :H]
            skip = skip + rs[:, H:]

        # forecast head only on the last out_seq timesteps of every batch elem
        skip_t = skip.reshape(Bt, seq, H)[:, seq - out_seq:, :]
        skip_t = skip_t.reshape(Bt * out_seq, H).astype(compute_dtype)
        fc = jnp.maximum(
            jnp.dot(skip_t, wf_ref[...],
                    preferred_element_type=jnp.float32) + bf_ref[...], 0.0)
        head = jnp.dot(fc.astype(compute_dtype), wls_ref[...],
                       preferred_element_type=jnp.float32) + bls_ref[...]
        # lanes [0:d_output) = loc, lanes [d_output:2*d_output) = scale
        is_scale = lax.broadcasted_iota(jnp.int32, head.shape, 1) >= d_output
        head = jnp.where(is_scale, _softplus(head) + 1e-6, head)
        out_ref[...] = head.reshape(Bt, out_seq, 2 * d_output)

    return kernel, pad


def _pick_block_batch(batch, seq, target_m=256, max_m=1024):
    """Pick the batch tile Bt (a divisor of batch).

    Priorities: (1) keep >= 2 grid steps so both v7x TensorCores get work,
    (2) push the matmul M-dim (Bt*seq) toward target_m, (3) prefer an even
    number of grid steps (even split over 2 TCs), (4) then the largest block
    to amortize the ~0.35us per-step pipeline overhead; Bt*seq is capped at
    max_m to bound the per-step VMEM working set.
    """
    if seq % 8 != 0 or batch <= 1:
        return 1
    divs = [d for d in range(1, batch + 1) if batch % d == 0]
    cands = [d for d in divs if d * seq <= max_m] or [1]

    def key(d):
        steps = batch // d
        m = d * seq
        return (steps >= 2, min(m, target_m), steps % 2 == 0, m)

    return max(cands, key=key)


def init_params(key, d_lag, d_cov, d_hidden, d_output, N, kernel_size):
    d_in = d_lag + d_cov
    H, K = d_hidden, kernel_size
    ks = jax.random.split(key, 16)

    def u(k, shape, bound):
        return jax.random.uniform(k, shape, jnp.float32, -bound, bound)

    k_up = math.sqrt(1.0 / d_in)            # nn.Linear default
    k_dil = math.sqrt(1.0 / (H * K))        # CustomConv1d init
    k_sr = math.sqrt(1.0 / H)               # Conv1d(H, 2H, 1) default
    k_lin = math.sqrt(1.0 / H)              # Linear(H, *) default

    # Weights stored pre-transposed so the kernel computes x @ W; the
    # "2*out_channels" of each conv is split into its two chunk-halves.
    return dict(
        wup=u(ks[0], (d_in, H), k_up),      bup=u(ks[1], (1, H), k_up),
        wdf=u(ks[2], (N, K, H, H), k_dil),  bdf=u(ks[3], (N, 1, H), k_dil),
        wdg=u(ks[4], (N, K, H, H), k_dil),  bdg=u(ks[5], (N, 1, H), k_dil),
        wsh=u(ks[6], (N, H, H), k_sr),      bsh=u(ks[7], (N, 1, H), k_sr),
        wss=u(ks[8], (N, H, H), k_sr),      bss=u(ks[9], (N, 1, H), k_sr),
        wf=u(ks[10], (H, H), k_lin),        bf=u(ks[11], (1, H), k_lin),
        wl=u(ks[12], (H, d_output), k_lin), bl=u(ks[13], (1, d_output), k_lin),
        ws=u(ks[14], (H, d_output), k_lin), bs=u(ks[15], (1, d_output), k_lin),
    )
    # TODO(synk): domain_classifier weights omitted — training-only branch,
    # loss_d is hard-coded to 0 in the reference forward.


def wavenet_dann_forward(params, X_emb, X_cov, X_lag, y, d_outputseqlen,
                         domain=None, alpha=1.0, compute_dtype=jnp.bfloat16):
    # d_emb == [] -> X_emb unused; eval mode -> domain / alpha unused.
    del X_emb, domain, alpha
    seq, batch, _ = X_lag.shape
    H = params['wf'].shape[0]
    d_output = params['wl'].shape[1]
    N, K = params['wdf'].shape[0], params['wdf'].shape[1]
    out_seq = int(d_outputseqlen)
    assert 0 < out_seq <= seq, "d_outputseqlen must be in (0, seq]"

    cd = compute_dtype
    # channels-last layout; activations stream HBM->VMEM in compute_dtype
    x = jnp.concatenate([X_lag, X_cov[:seq]], axis=-1)
    x = jnp.transpose(x, (1, 0, 2)).astype(cd)          # [batch, seq, d_in]
    d_in = x.shape[-1]

    Bt = _pick_block_batch(batch, seq)
    grid = (batch // Bt,)

    # Fused weights: filter|gate -> (N, K*H, 2H), residual|skip -> (N, H, 2H),
    # loc|scale -> (H, 2*d_output). bf16 MXU operands, f32 biases.
    weights = [
        params['wup'].astype(cd), params['bup'],
        jnp.concatenate([params['wdf'].reshape(N, K * H, H),
                         params['wdg'].reshape(N, K * H, H)], -1).astype(cd),
        jnp.concatenate([params['bdf'], params['bdg']], -1),
        jnp.concatenate([params['wsh'], params['wss']], -1).astype(cd),
        jnp.concatenate([params['bsh'], params['bss']], -1),
        params['wf'].astype(cd), params['bf'],
        jnp.concatenate([params['wl'], params['ws']], 1).astype(cd),
        jnp.concatenate([params['bl'], params['bs']], 1),
    ]

    def weight_spec(a):
        nd = a.ndim
        # grid-invariant index_map -> single-buffer (saves w_bytes of VMEM,
        # matters most under v7x's 64 MiB / TC).
        return pl.BlockSpec(a.shape, lambda b, nd=nd: (0,) * nd,
                            pipeline_mode=pl.Buffered(1))

    kernel, pad = _make_wavenet_kernel(Bt, seq, H, N, K, d_output, out_seq, cd)

    # VMEM budget: single-buffered resident weights + double-buffered x/out
    # blocks + bf16 causal-pad scratch; capped at chip capacity minus headroom
    # (v7x: 64 MiB/TC -> <= 56 MiB; v5e/v6e: 128 MiB -> <= 120 MiB).
    itemsize = jnp.dtype(cd).itemsize
    w_bytes = sum(int(w.size) * w.dtype.itemsize for w in weights)
    blk_bytes = Bt * seq * d_in * itemsize + Bt * out_seq * 2 * d_output * 4
    scratch_bytes = Bt * (pad + seq) * H * itemsize
    try:
        vmem_cap = int(pltpu.get_tpu_info().vmem_capacity_bytes)
    except Exception:
        vmem_cap = 64 << 20                 # conservative fallback (v7x per-TC)
    need = w_bytes + 2 * blk_bytes + scratch_bytes + (4 << 20)
    vmem_limit = int(min(vmem_cap - (8 << 20), max(32 << 20, need)))

    packed = pl.pallas_call(
        kernel,
        out_shape=jax.ShapeDtypeStruct((batch, out_seq, 2 * d_output),
                                       jnp.float32),
        grid=grid,
        in_specs=[pl.BlockSpec((Bt, seq, d_in), lambda b: (b, 0, 0))]
                 + [weight_spec(w) for w in weights],
        out_specs=pl.BlockSpec((Bt, out_seq, 2 * d_output),
                               lambda b: (b, 0, 0)),
        scratch_shapes=[pltpu.VMEM((Bt, pad + seq, H), cd)],
        compiler_params=pltpu.CompilerParams(
            dimension_semantics=("parallel",),
            vmem_limit_bytes=vmem_limit),
    )(x, *weights)

    # Tiny transpose of only the [batch, out_seq, 2*d_output] slab back to the
    # PyTorch [seq, batch, d_output] convention, then split loc / scale.
    packed = jnp.transpose(packed, (1, 0, 2))          # [out_seq, batch, 2*d]
    y_hat_loc = packed[..., :d_output]
    y_hat_scale = packed[..., d_output:]

    # Gaussian NLL folded into plain XLA (no lane-width-1 pallas_call).
    y_sl = y[-out_seq:].astype(jnp.float32)
    zz = (y_sl - y_hat_loc) / y_hat_scale
    loss_y = jnp.mean(0.5 * zz * zz + jnp.log(y_hat_scale)
                      + 0.5 * math.log(2.0 * math.pi))

    loss_d = 0.0                      # matches the module (hard-coded to 0)
    total_loss = loss_d + loss_y
    # Normal distribution object is represented by its (loc, scale) pair.
    return total_loss, loss_y, (y_hat_loc, y_hat_scale), y_hat_loc, y_hat_scale


# ---------------------------------------------------------------------------
# Pure-JAX reference (mirrors the PyTorch semantics) for a correctness check.
# ---------------------------------------------------------------------------
def reference_forward(params, X_cov, X_lag, y, out_seq):
    seq, B, _ = X_lag.shape
    H = params['wf'].shape[0]
    N, K = params['wdf'].shape[0], params['wdf'].shape[1]
    x = jnp.concatenate([X_lag, X_cov[:seq]], -1).astype(jnp.float32)
    h = x @ params['wup'] + params['bup'][0]
    skip = jnp.zeros((seq, B, H), jnp.float32)
    for i in range(N):
        dil = 2 ** i
        f = jnp.zeros((seq, B, H), jnp.float32) + params['bdf'][i, 0]
        g = jnp.zeros((seq, B, H), jnp.float32) + params['bdg'][i, 0]
        for k in range(K):
            s = (K - 1 - k) * dil
            hs = h if s == 0 else jnp.concatenate(
                [jnp.zeros((s, B, H), jnp.float32), h[:seq - s]], axis=0)
            f = f + hs @ params['wdf'][i, k]
            g = g + hs @ params['wdg'][i, k]
        z = jnp.tanh(f) * jax.nn.sigmoid(g)
        h = h + z @ params['wsh'][i] + params['bsh'][i, 0]
        skip = skip + z @ params['wss'][i] + params['bss'][i, 0]
    fc = jnp.maximum(skip @ params['wf'] + params['bf'][0], 0.0)
    loc = (fc @ params['wl'] + params['bl'][0])[-out_seq:]
    scale = (_softplus(fc @ params['ws'] + params['bs'][0]) + 1e-6)[-out_seq:]
    ysl = y[-out_seq:].astype(jnp.float32)
    z = (ysl - loc) / scale
    nll = 0.5 * z * z + jnp.log(scale) + 0.5 * math.log(2.0 * math.pi)
    return nll.mean(), loc, scale


if __name__ == "__main__":
    import numpy as np

    d_lag, d_cov, d_hidden, d_output = 3, 2, 128, 1
    d_dim = 3                      # domain classes (unused in eval)
    N, kernel_size = 2, 2
    seq, batch, d_outputseqlen = 16, 4, 8

    key = jax.random.PRNGKey(0)
    kp, kx = jax.random.split(key)
    params = init_params(kp, d_lag, d_cov, d_hidden, d_output, N, kernel_size)

    k1, k2, k3 = jax.random.split(kx, 3)
    X_lag = jax.random.normal(k1, (seq, batch, d_lag), jnp.float32)
    X_cov = jax.random.normal(k2, (seq, batch, d_cov), jnp.float32)
    y = jax.random.normal(k3, (seq, batch, d_output), jnp.float32)
    X_emb = jnp.zeros((seq, batch, 0), jnp.int32)    # d_emb = [] -> unused
    domain = jnp.zeros((batch, d_dim), jnp.float32)  # unused in eval mode

    total_loss, loss_y, _distr, y_hat_loc, y_hat_scale = wavenet_dann_forward(
        params, X_emb, X_cov, X_lag, y, d_outputseqlen, domain)
    jax.block_until_ready((total_loss, loss_y, y_hat_loc, y_hat_scale))

    ref_loss, ref_loc, ref_scale = reference_forward(
        params, X_cov, X_lag, y, d_outputseqlen)
    # tolerance relaxed for bf16 MXU operands (f32 accumulation)
    np.testing.assert_allclose(np.asarray(y_hat_loc), np.asarray(ref_loc),
                               rtol=5e-2, atol=5e-2)
    np.testing.assert_allclose(np.asarray(y_hat_scale), np.asarray(ref_scale),
                               rtol=5e-2, atol=5e-2)
    np.testing.assert_allclose(float(loss_y), float(ref_loss),
                               rtol=5e-2, atol=5e-2)

    print("KERNEL_OK")
</pallas_src>

<mosaic_0001>
module attributes {stable_mosaic.version = 11 : i64} {
  func.func @kernel(%arg0: i32, %arg1: memref<2x16x5xbf16, #tpu.memory_space<vmem>>, %arg2: memref<5x128xbf16, #tpu.memory_space<vmem>>, %arg3: memref<1x128xf32, #tpu.memory_space<vmem>>, %arg4: memref<2x256x256xbf16, #tpu.memory_space<vmem>>, %arg5: memref<2x1x256xf32, #tpu.memory_space<vmem>>, %arg6: memref<2x128x256xbf16, #tpu.memory_space<vmem>>, %arg7: memref<2x1x256xf32, #tpu.memory_space<vmem>>, %arg8: memref<128x128xbf16, #tpu.memory_space<vmem>>, %arg9: memref<1x128xf32, #tpu.memory_space<vmem>>, %arg10: memref<128x2xbf16, #tpu.memory_space<vmem>>, %arg11: memref<1x2xf32, #tpu.memory_space<vmem>>, %arg12: memref<2x8x2xf32, #tpu.memory_space<vmem>>, %arg13: memref<2x24x128xbf16, #tpu.memory_space<vmem>>) attributes {dimension_semantics = [#tpu.dimension_semantics<parallel>], iteration_bounds = array<i64: 2>, scalar_prefetch = 0 : i64, scratch_operands = 1 : i64, tpu.core_type = #tpu.core_type<tc>, window_params = [{transform_indices = @transform_0, window_bounds = array<i64: 2, 16, 5>}, {pipeline_mode = #tpu.pipeline_mode<synchronous>, transform_indices = @transform_1, window_bounds = array<i64: 5, 128>}, {pipeline_mode = #tpu.pipeline_mode<synchronous>, transform_indices = @transform_2, window_bounds = array<i64: 1, 128>}, {pipeline_mode = #tpu.pipeline_mode<synchronous>, transform_indices = @transform_3, window_bounds = array<i64: 2, 256, 256>}, {pipeline_mode = #tpu.pipeline_mode<synchronous>, transform_indices = @transform_4, window_bounds = array<i64: 2, 1, 256>}, {pipeline_mode = #tpu.pipeline_mode<synchronous>, transform_indices = @transform_5, window_bounds = array<i64: 2, 128, 256>}, {pipeline_mode = #tpu.pipeline_mode<synchronous>, transform_indices = @transform_6, window_bounds = array<i64: 2, 1, 256>}, {pipeline_mode = #tpu.pipeline_mode<synchronous>, transform_indices = @transform_7, window_bounds = array<i64: 128, 128>}, {pipeline_mode = #tpu.pipeline_mode<synchronous>, transform_indices = @transform_8, window_bounds = array<i64: 1, 128>}, {pipeline_mode = #tpu.pipeline_mode<synchronous>, transform_indices = @transform_9, window_bounds = array<i64: 128, 2>}, {pipeline_mode = #tpu.pipeline_mode<synchronous>, transform_indices = @transform_10, window_bounds = array<i64: 1, 2>}, {transform_indices = @transform_11, window_bounds = array<i64: 2, 8, 2>}]} {
    %c0 = arith.constant 0 : index
    %c0_0 = arith.constant 0 : index
    %c0_1 = arith.constant 0 : index
    %0 = vector.load %arg1[%c0, %c0_0, %c0_1] : memref<2x16x5xbf16, #tpu.memory_space<vmem>>, vector<2x16x5xbf16>
    %1 = vector.shape_cast %0 : vector<2x16x5xbf16> to vector<32x5xbf16>
    %c0_2 = arith.constant 0 : index
    %c0_3 = arith.constant 0 : index
    %2 = vector.load %arg2[%c0_2, %c0_3] : memref<5x128xbf16, #tpu.memory_space<vmem>>, vector<5x128xbf16>
    %cst = arith.constant dense<0.000000e+00> : vector<32x128xf32>
    %3 = tpu.matmul %1, %2, %cst {dimension_numbers = #tpu.dot_dimension_numbers<[1], [0], [0], [1], [0, 0, 1, 1], [], []>} : vector<32x5xbf16>, vector<5x128xbf16>, vector<32x128xf32> -> vector<32x128xf32>
    %c0_4 = arith.constant 0 : index
    %c0_5 = arith.constant 0 : index
    %4 = vector.load %arg3[%c0_4, %c0_5] : memref<1x128xf32, #tpu.memory_space<vmem>>, vector<1x128xf32>
    %5 = vector.broadcast %4 : vector<1x128xf32> to vector<32x128xf32>
    %6 = arith.addf %3, %5 : vector<32x128xf32>
    %cst_6 = arith.constant 0.000000e+00 : f32
    %7 = vector.broadcast %cst_6 : f32 to vector<32x128xf32>
    %cst_7 = arith.constant 0.000000e+00 : bf16
    %8 = vector.broadcast %cst_7 : bf16 to vector<2x8x128xbf16>
    %c0_8 = arith.constant 0 : index
    %c0_9 = arith.constant 0 : index
    %c0_10 = arith.constant 0 : index
    %9 = vector.load %arg13[%c0_8, %c0_9, %c0_10] : memref<2x24x128xbf16, #tpu.memory_space<vmem>>, vector<2x8x128xbf16>
    tpu.vector_store %arg13[%c0_8, %c0_9, %c0_10], %8 {strides = array<i32>} : memref<2x24x128xbf16, #tpu.memory_space<vmem>>, vector<2x8x128xbf16>,
    %10 = arith.truncf %6 : vector<32x128xf32> to vector<32x128xbf16>
    %11 = vector.shape_cast %10 : vector<32x128xbf16> to vector<2x16x128xbf16>
    %c0_11 = arith.constant 0 : index
    %c8 = arith.constant 8 : index
    %c0_12 = arith.constant 0 : index
    %12 = vector.load %arg13[%c0_11, %c8, %c0_12] : memref<2x24x128xbf16, #tpu.memory_space<vmem>>, vector<2x16x128xbf16>
    tpu.vector_store %arg13[%c0_11, %c8, %c0_12], %11 {strides = array<i32>} : memref<2x24x128xbf16, #tpu.memory_space<vmem>>, vector<2x16x128xbf16>,
    %c0_13 = arith.constant 0 : index
    %c7 = arith.constant 7 : index
    %c0_14 = arith.constant 0 : index
    %13 = vector.load %arg13[%c0_13, %c7, %c0_14] : memref<2x24x128xbf16, #tpu.memory_space<vmem>>, vector<2x16x128xbf16>
    %14 = tpu.concatenate %13, %11 in 2 : vector<2x16x128xbf16>, vector<2x16x128xbf16> -> vector<2x16x256xbf16>
    %15 = vector.shape_cast %14 : vector<2x16x256xbf16> to vector<32x256xbf16>
    %c0_15 = arith.constant 0 : index
    %c0_16 = arith.constant 0 : index
    %c0_17 = arith.constant 0 : index
    %16 = vector.load %arg4[%c0_15, %c0_16, %c0_17] : memref<2x256x256xbf16, #tpu.memory_space<vmem>>, vector<1x256x256xbf16>
    %17 = vector.shape_cast %16 : vector<1x256x256xbf16> to vector<256x256xbf16>
    %cst_18 = arith.constant dense<0.000000e+00> : vector<32x256xf32>
    %18 = tpu.matmul %15, %17, %cst_18 {dimension_numbers = #tpu.dot_dimension_numbers<[1], [0], [0], [1], [0, 0, 1, 1], [], []>} : vector<32x256xbf16>, vector<256x256xbf16>, vector<32x256xf32> -> vector<32x256xf32>
    %c0_19 = arith.constant 0 : index
    %c0_20 = arith.constant 0 : index
    %c0_21 = arith.constant 0 : index
    %19 = vector.load %arg5[%c0_19, %c0_20, %c0_21] : memref<2x1x256xf32, #tpu.memory_space<vmem>>, vector<1x1x256xf32>
    %20 = vector.shape_cast %19 : vector<1x1x256xf32> to vector<1x256xf32>
    %21 = vector.broadcast %20 : vector<1x256xf32> to vector<32x256xf32>
    %22 = arith.addf %18, %21 : vector<32x256xf32>
    %23 = vector.extract_strided_slice %22 {offsets = [0, 0], sizes = [32, 128], strides = [1, 1]} : vector<32x256xf32> to vector<32x128xf32>
    %24 = math.tanh %23 : vector<32x128xf32>
    %25 = vector.extract_strided_slice %22 {offsets = [0, 128], sizes = [32, 128], strides = [1, 1]} : vector<32x256xf32> to vector<32x128xf32>
    %26 = arith.negf %25 : vector<32x128xf32>
    %27 = math.exp %26 : vector<32x128xf32>
    %cst_22 = arith.constant 1.000000e+00 : f32
    %28 = vector.broadcast %cst_22 : f32 to vector<32x128xf32>
    %29 = arith.addf %28, %27 : vector<32x128xf32>
    %30 = arith.divf %28, %29 : vector<32x128xf32>
    %31 = arith.mulf %24, %30 : vector<32x128xf32>
    %32 = arith.truncf %31 : vector<32x128xf32> to vector<32x128xbf16>
    %c0_23 = arith.constant 0 : index
    %c0_24 = arith.constant 0 : index
    %c0_25 = arith.constant 0 : index
    %33 = vector.load %arg6[%c0_23, %c0_24, %c0_25] : memref<2x128x256xbf16, #tpu.memory_space<vmem>>, vector<1x128x256xbf16>
    %34 = vector.shape_cast %33 : vector<1x128x256xbf16> to vector<128x256xbf16>
    %cst_26 = arith.constant dense<0.000000e+00> : vector<32x256xf32>
    %35 = tpu.matmul %32, %34, %cst_26 {dimension_numbers = #tpu.dot_dimension_numbers<[1], [0], [0], [1], [0, 0, 1, 1], [], []>} : vector<32x128xbf16>, vector<128x256xbf16>, vector<32x256xf32> -> vector<32x256xf32>
    %c0_27 = arith.constant 0 : index
    %c0_28 = arith.constant 0 : index
    %c0_29 = arith.constant 0 : index
    %36 = vector.load %arg7[%c0_27, %c0_28, %c0_29] : memref<2x1x256xf32, #tpu.memory_space<vmem>>, vector<1x1x256xf32>
    %37 = vector.shape_cast %36 : vector<1x1x256xf32> to vector<1x256xf32>
    %38 = vector.broadcast %37 : vector<1x256xf32> to vector<32x256xf32>
    %39 = arith.addf %35, %38 : vector<32x256xf32>
    %40 = vector.extract_strided_slice %39 {offsets = [0, 0], sizes = [32, 128], strides = [1, 1]} : vector<32x256xf32> to vector<32x128xf32>
    %41 = arith.addf %6, %40 : vector<32x128xf32>
    %42 = vector.extract_strided_slice %39 {offsets = [0, 128], sizes = [32, 128], strides = [1, 1]} : vector<32x256xf32> to vector<32x128xf32>
    %43 = arith.addf %7, %42 : vector<32x128xf32>
    %44 = arith.truncf %41 : vector<32x128xf32> to vector<32x128xbf16>
    %45 = vector.shape_cast %44 : vector<32x128xbf16> to vector<2x16x128xbf16>
    %c0_30 = arith.constant 0 : index
    %c8_31 = arith.constant 8 : index
    %c0_32 = arith.constant 0 : index
    %46 = vector.load %arg13[%c0_30, %c8_31, %c0_32] : memref<2x24x128xbf16, #tpu.memory_space<vmem>>, vector<2x16x128xbf16>
    tpu.vector_store %arg13[%c0_30, %c8_31, %c0_32], %45 {strides = array<i32>} : memref<2x24x128xbf16, #tpu.memory_space<vmem>>, vector<2x16x128xbf16>,
    %c0_33 = arith.constant 0 : index
    %c6 = arith.constant 6 : index
    %c0_34 = arith.constant 0 : index
    %47 = vector.load %arg13[%c0_33, %c6, %c0_34] : memref<2x24x128xbf16, #tpu.memory_space<vmem>>, vector<2x16x128xbf16>
    %48 = tpu.concatenate %47, %45 in 2 : vector<2x16x128xbf16>, vector<2x16x128xbf16> -> vector<2x16x256xbf16>
    %49 = vector.shape_cast %48 : vector<2x16x256xbf16> to vector<32x256xbf16>
    %c1 = arith.constant 1 : index
    %c0_35 = arith.constant 0 : index
    %c0_36 = arith.constant 0 : index
    %50 = vector.load %arg4[%c1, %c0_35, %c0_36] : memref<2x256x256xbf16, #tpu.memory_space<vmem>>, vector<1x256x256xbf16>
    %51 = vector.shape_cast %50 : vector<1x256x256xbf16> to vector<256x256xbf16>
    %cst_37 = arith.constant dense<0.000000e+00> : vector<32x256xf32>
    %52 = tpu.matmul %49, %51, %cst_37 {dimension_numbers = #tpu.dot_dimension_numbers<[1], [0], [0], [1], [0, 0, 1, 1], [], []>} : vector<32x256xbf16>, vector<256x256xbf16>, vector<32x256xf32> -> vector<32x256xf32>
    %c1_38 = arith.constant 1 : index
    %c0_39 = arith.constant 0 : index
    %c0_40 = arith.constant 0 : index
    %53 = vector.load %arg5[%c1_38, %c0_39, %c0_40] : memref<2x1x256xf32, #tpu.memory_space<vmem>>, vector<1x1x256xf32>
    %54 = vector.shape_cast %53 : vector<1x1x256xf32> to vector<1x256xf32>
    %55 = vector.broadcast %54 : vector<1x256xf32> to vector<32x256xf32>
    %56 = arith.addf %52, %55 : vector<32x256xf32>
    %57 = vector.extract_strided_slice %56 {offsets = [0, 0], sizes = [32, 128], strides = [1, 1]} : vector<32x256xf32> to vector<32x128xf32>
    %58 = math.tanh %57 : vector<32x128xf32>
    %59 = vector.extract_strided_slice %56 {offsets = [0, 128], sizes = [32, 128], strides = [1, 1]} : vector<32x256xf32> to vector<32x128xf32>
    %60 = arith.negf %59 : vector<32x128xf32>
    %61 = math.exp %60 : vector<32x128xf32>
    %cst_41 = arith.constant 1.000000e+00 : f32
    %62 = vector.broadcast %cst_41 : f32 to vector<32x128xf32>
    %63 = arith.addf %62, %61 : vector<32x128xf32>
    %64 = arith.divf %62, %63 : vector<32x128xf32>
    %65 = arith.mulf %58, %64 : vector<32x128xf32>
    %66 = arith.truncf %65 : vector<32x128xf32> to vector<32x128xbf16>
    %c1_42 = arith.constant 1 : index
    %c0_43 = arith.constant 0 : index
    %c0_44 = arith.constant 0 : index
    %67 = vector.load %arg6[%c1_42, %c0_43, %c0_44] : memref<2x128x256xbf16, #tpu.memory_space<vmem>>, vector<1x128x256xbf16>
    %68 = vector.shape_cast %67 : vector<1x128x256xbf16> to vector<128x256xbf16>
    %cst_45 = arith.constant dense<0.000000e+00> : vector<32x256xf32>
    %69 = tpu.matmul %66, %68, %cst_45 {dimension_numbers = #tpu.dot_dimension_numbers<[1], [0], [0], [1], [0, 0, 1, 1], [], []>} : vector<32x128xbf16>, vector<128x256xbf16>, vector<32x256xf32> -> vector<32x256xf32>
    %c1_46 = arith.constant 1 : index
    %c0_47 = arith.constant 0 : index
    %c0_48 = arith.constant 0 : index
    %70 = vector.load %arg7[%c1_46, %c0_47, %c0_48] : memref<2x1x256xf32, #tpu.memory_space<vmem>>, vector<1x1x256xf32>
    %71 = vector.shape_cast %70 : vector<1x1x256xf32> to vector<1x256xf32>
    %72 = vector.broadcast %71 : vector<1x256xf32> to vector<32x256xf32>
    %73 = arith.addf %69, %72 : vector<32x256xf32>
    %74 = vector.extract_strided_slice %73 {offsets = [0, 128], sizes = [32, 128], strides = [1, 1]} : vector<32x256xf32> to vector<32x128xf32>
    %75 = arith.addf %43, %74 : vector<32x128xf32>
    %76 = vector.shape_cast %75 : vector<32x128xf32> to vector<2x16x128xf32>
    %77 = vector.extract_strided_slice %76 {offsets = [0, 8, 0], sizes = [2, 8, 128], strides = [1, 1, 1]} : vector<2x16x128xf32> to vector<2x8x128xf32>
    %78 = vector.shape_cast %77 : vector<2x8x128xf32> to vector<16x128xf32>
    %79 = arith.truncf %78 : vector<16x128xf32> to vector<16x128xbf16>
    %c0_49 = arith.constant 0 : index
    %c0_50 = arith.constant 0 : index
    %80 = vector.load %arg8[%c0_49, %c0_50] : memref<128x128xbf16, #tpu.memory_space<vmem>>, vector<128x128xbf16>
    %cst_51 = arith.constant dense<0.000000e+00> : vector<16x128xf32>
    %81 = tpu.matmul %79, %80, %cst_51 {dimension_numbers = #tpu.dot_dimension_numbers<[1], [0], [0], [1], [0, 0, 1, 1], [], []>} : vector<16x128xbf16>, vector<128x128xbf16>, vector<16x128xf32> -> vector<16x128xf32>
    %c0_52 = arith.constant 0 : index
    %c0_53 = arith.constant 0 : index
    %82 = vector.load %arg9[%c0_52, %c0_53] : memref<1x128xf32, #tpu.memory_space<vmem>>, vector<1x128xf32>
    %83 = vector.broadcast %82 : vector<1x128xf32> to vector<16x128xf32>
    %84 = arith.addf %81, %83 : vector<16x128xf32>
    %cst_54 = arith.constant 0.000000e+00 : f32
    %85 = vector.broadcast %cst_54 : f32 to vector<16x128xf32>
    %86 = arith.maximumf %84, %85 : vector<16x128xf32>
    %87 = arith.truncf %86 : vector<16x128xf32> to vector<16x128xbf16>
    %c0_55 = arith.constant 0 : index
    %c0_56 = arith.constant 0 : index
    %88 = vector.load %arg10[%c0_55, %c0_56] : memref<128x2xbf16, #tpu.memory_space<vmem>>, vector<128x2xbf16>
    %cst_57 = arith.constant dense<0.000000e+00> : vector<16x2xf32>
    %89 = tpu.matmul %87, %88, %cst_57 {dimension_numbers = #tpu.dot_dimension_numbers<[1], [0], [0], [1], [0, 0, 1, 1], [], []>} : vector<16x128xbf16>, vector<128x2xbf16>, vector<16x2xf32> -> vector<16x2xf32>
    %c0_58 = arith.constant 0 : index
    %c0_59 = arith.constant 0 : index
    %90 = vector.load %arg11[%c0_58, %c0_59] : memref<1x2xf32, #tpu.memory_space<vmem>>, vector<1x2xf32>
    %91 = vector.broadcast %90 : vector<1x2xf32> to vector<16x2xf32>
    %92 = arith.addf %89, %91 : vector<16x2xf32>
    %93 = tpu.iota {dimensions = array<i32: 1>} : vector<16x2xi32>
    %c1_i32 = arith.constant 1 : i32
    %94 = vector.broadcast %c1_i32 : i32 to vector<16x2xi32>
    %95 = arith.cmpi sge, %93, %94 : vector<16x2xi32>
    %cst_60 = arith.constant 0.000000e+00 : f32
    %96 = vector.broadcast %cst_60 : f32 to vector<16x2xf32>
    %97 = arith.maximumf %92, %96 : vector<16x2xf32>
    %98 = math.absf %92 : vector<16x2xf32>
    %cst_61 = arith.constant 0.000000e+00 : f32
    %99 = vector.broadcast %cst_61 : f32 to vector<16x2xf32>
    %100 = arith.subf %99, %98 : vector<16x2xf32>
    %101 = math.exp %100 : vector<16x2xf32>
    %cst_62 = arith.constant 1.000000e+00 : f32
    %102 = vector.broadcast %cst_62 : f32 to vector<16x2xf32>
    %103 = arith.addf %102, %101 : vector<16x2xf32>
    %104 = math.log %103 : vector<16x2xf32>
    %105 = arith.addf %97, %104 : vector<16x2xf32>
    %cst_63 = arith.constant 9.99999997E-7 : f32
    %106 = vector.broadcast %cst_63 : f32 to vector<16x2xf32>
    %107 = arith.addf %105, %106 : vector<16x2xf32>
    %108 = arith.select %95, %107, %92 : vector<16x2xi1>, vector<16x2xf32>
    %109 = vector.shape_cast %108 : vector<16x2xf32> to vector<2x8x2xf32>
    %c0_64 = arith.constant 0 : index
    %c0_65 = arith.constant 0 : index
    %c0_66 = arith.constant 0 : index
    %110 = vector.load %arg12[%c0_64, %c0_65, %c0_66] : memref<2x8x2xf32, #tpu.memory_space<vmem>>, vector<2x8x2xf32>
    tpu.vector_store %arg12[%c0_64, %c0_65, %c0_66], %109 {strides = array<i32>} : memref<2x8x2xf32, #tpu.memory_space<vmem>>, vector<2x8x2xf32>,
    return
  }
  func.func @transform_0(%arg0: i32) -> (i32, i32, i32) {
    %c0_i32 = arith.constant 0 : i32
    %c0_i32_0 = arith.constant 0 : i32
    %c0_i32_1 = arith.constant 0 : i32
    return %arg0, %c0_i32, %c0_i32_0 : i32, i32, i32
  }
  func.func @transform_1(%arg0: i32) -> (i32, i32) {
    %c0_i32 = arith.constant 0 : i32
    %c0_i32_0 = arith.constant 0 : i32
    %c0_i32_1 = arith.constant 0 : i32
    return %c0_i32, %c0_i32_0 : i32, i32
  }
  func.func @transform_2(%arg0: i32) -> (i32, i32) {
    %c0_i32 = arith.constant 0 : i32
    %c0_i32_0 = arith.constant 0 : i32
    %c0_i32_1 = arith.constant 0 : i32
    return %c0_i32, %c0_i32_0 : i32, i32
  }
  func.func @transform_3(%arg0: i32) -> (i32, i32, i32) {
    %c0_i32 = arith.constant 0 : i32
    %c0_i32_0 = arith.constant 0 : i32
    %c0_i32_1 = arith.constant 0 : i32
    %c0_i32_2 = arith.constant 0 : i32
    return %c0_i32, %c0_i32_0, %c0_i32_1 : i32, i32, i32
  }
  func.func @transform_4(%arg0: i32) -> (i32, i32, i32) {
    %c0_i32 = arith.constant 0 : i32
    %c0_i32_0 = arith.constant 0 : i32
    %c0_i32_1 = arith.constant 0 : i32
    %c0_i32_2 = arith.constant 0 : i32
    return %c0_i32, %c0_i32_0, %c0_i32_1 : i32, i32, i32
  }
  func.func @transform_5(%arg0: i32) -> (i32, i32, i32) {
    %c0_i32 = arith.constant 0 : i32
    %c0_i32_0 = arith.constant 0 : i32
    %c0_i32_1 = arith.constant 0 : i32
    %c0_i32_2 = arith.constant 0 : i32
    return %c0_i32, %c0_i32_0, %c0_i32_1 : i32, i32, i32
  }
  func.func @transform_6(%arg0: i32) -> (i32, i32, i32) {
    %c0_i32 = arith.constant 0 : i32
    %c0_i32_0 = arith.constant 0 : i32
    %c0_i32_1 = arith.constant 0 : i32
    %c0_i32_2 = arith.constant 0 : i32
    return %c0_i32, %c0_i32_0, %c0_i32_1 : i32, i32, i32
  }
  func.func @transform_7(%arg0: i32) -> (i32, i32) {
    %c0_i32 = arith.constant 0 : i32
    %c0_i32_0 = arith.constant 0 : i32
    %c0_i32_1 = arith.constant 0 : i32
    return %c0_i32, %c0_i32_0 : i32, i32
  }
  func.func @transform_8(%arg0: i32) -> (i32, i32) {
    %c0_i32 = arith.constant 0 : i32
    %c0_i32_0 = arith.constant 0 : i32
    %c0_i32_1 = arith.constant 0 : i32
    return %c0_i32, %c0_i32_0 : i32, i32
  }
  func.func @transform_9(%arg0: i32) -> (i32, i32) {
    %c0_i32 = arith.constant 0 : i32
    %c0_i32_0 = arith.constant 0 : i32
    %c0_i32_1 = arith.constant 0 : i32
    return %c0_i32, %c0_i32_0 : i32, i32
  }
  func.func @transform_10(%arg0: i32) -> (i32, i32) {
    %c0_i32 = arith.constant 0 : i32
    %c0_i32_0 = arith.constant 0 : i32
    %c0_i32_1 = arith.constant 0 : i32
    return %c0_i32, %c0_i32_0 : i32, i32
  }
  func.func @transform_11(%arg0: i32) -> (i32, i32, i32) {
    %c0_i32 = arith.constant 0 : i32
    %c0_i32_0 = arith.constant 0 : i32
    %c0_i32_1 = arith.constant 0 : i32
    return %arg0, %c0_i32, %c0_i32_0 : i32, i32, i32
  }
}

</mosaic_0001>

<bundles_post_ra>
// kernel: tpu_custom_call.1
= control target key start
LH: loop header
LB: loop body
LE: loop exit
PB: predicated region body
PF: predicated region fallthrough
CT: control target
= control target key end

     0   :  { %16 = vsyncpa [#allocation4], 0  ;;  %s2928_s0 = inlined_call_operand.vmem [shape: bf16[4,16,5], index: 0, kind: input, shape index: {}]   ;;  %s2929_s1 = inlined_call_operand.vmem [shape: bf16[5,128], index: 1, kind: input, shape index: {}]   ;;  %s2930_s2 = inlined_call_operand.vmem [shape: f32[1,128], index: 2, kind: input, shape index: {}]   ;;  %s2931_s3 = inlined_call_operand.hbm [shape: bf16[2,256,256], index: 3, kind: input, shape index: {}]   ;;  %s2932_s4 = inlined_call_operand.vmem [shape: f32[2,1,256], index: 4, kind: input, shape index: {}]   ;;  %s2933_s5 = inlined_call_operand.hbm [shape: bf16[2,128,256], index: 5, kind: input, shape index: {}]   ;;  %s2934_s6 = inlined_call_operand.vmem [shape: f32[2,1,256], index: 6, kind: input, shape index: {}]   ;;  %s2935_s7 = inlined_call_operand.vmem [shape: bf16[128,128], index: 7, kind: input, shape index: {}]   ;;  %s2936_s8 = inlined_call_operand.vmem [shape: f32[1,128], index: 8, kind: input, shape index: {}]   ;;  %s2937_s9 = inlined_call_operand.vmem [shape: bf16[128,2], index: 9, kind: input, shape index: {}]   ;;  %s2938_s10 = inlined_call_operand.vmem [shape: f32[1,2], index: 10, kind: input, shape index: {}]   ;;  %s2939_s11 = inlined_call_operand.vmem [shape: f32[4,8,2], index: 11, kind: output, shape index: {}]  }
   0x1   :  { %17 = vsyncpa [#allocation6], 0  ;;  %s2706_s17 = smov 0  }
   0x2 LB: > { %s307_s20 = sshll.u32 %s2931_s3, 4  ;;  %s1881_s21 = sadd.s32 4294967295, %s2638_s17   ;;  %s2638_s17 = sphi %s2706_s17, %s23_s17   ;;  %s308_s20 = int_to_ptr.hbm [resolvable:$true] %s307_s20 }
   0x3   : > { %p1883_p0 = scmp.ge.s32.totalorder %s2638_s17, 1  ;;  %p290_p1 = scmp.lt.s32.totalorder %s2638_s17, 3 }
   0x4   : > { %p2717_p2 = scmp.eq.s32.totalorder %s1881_s21, 0  ;;  %s2640_s24 = smov [#allocation3]  }
   0x5   : > { %p2721_p3 = pnand %p1883_p0, %p290_p1  ;;  %s309_s25 = sshll.u32 %s2640_s24, 4  ;;  %s310_s25 = int_to_ptr.vmem [resolvable:$true] %s309_s25 }
   0x6   : > { %s324_s28 = sshll.u32 %s2933_s5, 4  ;;  %s2641_s29 = smov [#allocation5]   ;;  %s325_s28 = int_to_ptr.hbm [resolvable:$true] %s324_s28 }
   0x7   : > { %p2480_p4 = pneg %p2721_p3  ;;  %s326_s30 = sshll.u32 %s2641_s29, 4  ;;  %s327_s30 = int_to_ptr.vmem [resolvable:$true] %s326_s30 }
   0x8   : > { %s2642_s12 = smov 128   ;;  %s2643_s13 = smov 8  }
   0x9   : > { %p2481_p5 = pnand %p2717_p2, %p2480_p4  ;;  %367 = sbr.rel (%p2721_p3) target bundleno = 1152 (0x480), region = 64 }
   0xb   : > { %2483 = dma.hbm_to_vmem [thread:$0]  (!%p2481_p5), %s308_s20, 8192, %s310_s25, [#allocation4], %s2642_s12, %s2642_s12, %s2643_s13  }
   0xc   : > { %2486 = dma.hbm_to_vmem [thread:$0]  (!%p2481_p5), %s325_s28, 4096, %s327_s30, [#allocation6], %s2642_s12, %s2642_s12, %s2643_s13  }
   0xe   : > { %2629 = dma.done.wait (%p2717_p2), [#allocation4], 8192  }
   0xf   : > { %2631 = vsyncadd (%p2717_p2), [#allocation4], 4294959104 }
  0x10   : > { %2633 = dma.done.wait (%p2717_p2), [#allocation6], 4096  }
  0x11   : > { %2635 = vsyncadd (%p2717_p2), [#allocation6], 4294963200  ;;  %vm454_vm0 = vcmask 1041408   ;;  %s1890_s14 = sshll.u32 %s1881_s21, 1  ;;  %vm455_vm1 = vcmask 1042432   ;;  %v2644_v0 = vmov 65535  }
  0x12   : > { %p415_p6 = scmp.lt.s32.totalorder %s1890_s14, 3  ;;  %v456_v1 = vsel %vm454_vm0, 4294967295, %v2644_v0  ;;  %v432_v3 = vld [vmem:[%s2929_s1] sm:$0x7]  ;;  %v2035_v5 = vld [vmem:[#allocation3 + $0xf0] sm:$0xf] }
  0x13   : > { %v457_v2 = vsel %vm455_vm1, %v456_v1, 0  ;;  %v2385_v6 = vld [vmem:[#allocation3 + $0xf4] sm:$0xf0]  ;;  %v2384_v7 = vld [vmem:[#allocation3 + $0xf4] sm:$0xf]  ;;  %vm447_vm2 = vcmask 39936  }
  0x14   : > { %s2945_s14 = smov (!%p415_p6, %s1890_s14), 3  ;;  %v459_v4 = vand.u32 %v457_v2, %v432_v3  ;;  %v2036_v9 = vor.u32 %v2385_v6, %v2035_v5  ;;  %v2037_v10 = vld [vmem:[#allocation3 + $0xf8] sm:$0xf0]  ;;  %v1971_v13 = vld [vmem:[#allocation3 + $0x70] sm:$0xf]  ;;  %v2645_v37 = vmov 0  }
  0x15   : > { %s2349_s15 = sshll.u32 %s2945_s14, 3  ;;  %v2040_v11 = vor.u32 %v2384_v7, %v2037_v10  ;;  %v2369_v14 = vld [vmem:[#allocation3 + $0x74] sm:$0xf0]  ;;  %v2368_v15 = vld [vmem:[#allocation3 + $0x74] sm:$0xf] }
  0x16   : > { %s419_s19 = scalar_lea.vmem %s2928_s0, %s2349_s15  ;;  %468 = vmatpush.bf16.msra.mxu0 %v459_v4  ;;  %812 = vmatpush.bf16.msra.mxu2 %v2036_v9  ;;  %v1972_v16 = vor.u32 %v2369_v14, %v1971_v13  ;;  %v1973_v17 = vld [vmem:[#allocation3 + $0x78] sm:$0xf0]  ;;  %v2027_v18 = vld [vmem:[#allocation3 + $0xe0] sm:$0xf]  ;;  %v2383_v19 = vld [vmem:[#allocation3 + $0xe4] sm:$0xf0]  ;;  %s425_s21 = scalar_lea.vmem %s2939_s11, %s2349_s15 }
  0x17   : > { %v2350_v8 = vld [vmem:[%s419_s19] sm:$0xff]  ;;  %v2351_v12 = vld [vmem:[%s419_s19 + $0x8] sm:$0xff]  ;;  %v1976_v20 = vor.u32 %v2368_v15, %v1973_v17  ;;  %v2028_v21 = vor.u32 %v2383_v19, %v2027_v18  ;;  %v2382_v22 = vld [vmem:[#allocation3 + $0xe4] sm:$0xf]  ;;  %480 = vst [vmem:[#allocation2] sm:$0xf] %v2645_v37 }
  0x18   : > { %v2029_v23 = vld [vmem:[#allocation3 + $0xe8] sm:$0xf0]  ;;  %793 = vmatpush.bf16.msra.mxu1 %v1972_v16  ;;  %v1963_v25 = vld [vmem:[#allocation3 + $0x60] sm:$0xf]  ;;  %v2367_v26 = vld [vmem:[#allocation3 + $0x64] sm:$0xf0] }
  0x19   : > { %1903 = vmatmul.msk.bf16.vlgmr.msra.gmra.mxu0 %vm447_vm2, %v2350_v8  ;;  %v2032_v24 = vor.u32 %v2382_v22, %v2029_v23  ;;  %831 = vmatpush.bf16.msra.mxu3 %v1976_v20  ;;  %v2366_v27 = vld [vmem:[#allocation3 + $0x64] sm:$0xf]  ;;  %v1964_v28 = vor.u32 %v2367_v26, %v1963_v25  ;;  %v1965_v29 = vld [vmem:[#allocation3 + $0x68] sm:$0xf0]  ;;  %v2019_v30 = vld [vmem:[#allocation3 + $0xd0] sm:$0xf] }
  0x1a   : > { %850 = vmatpush.bf16.msrb.mxu0 %v2040_v11  ;;  %813 = vmatpush.bf16.msra.mxu2 %v2028_v21  ;;  %v2381_v31 = vld [vmem:[#allocation3 + $0xd4] sm:$0xf0]  ;;  %v1968_v32 = vor.u32 %v2366_v27, %v1965_v29  ;;  %v2380_v34 = vld [vmem:[#allocation3 + $0xd4] sm:$0xf]  ;;  %v2021_v35 = vld [vmem:[#allocation3 + $0xd8] sm:$0xf0] }
  0x1b   : > { %v2020_v33 = vor.u32 %v2381_v31, %v2019_v30  ;;  %v2024_v36 = vor.u32 %v2380_v34, %v2021_v35  ;;  %v1955_v38 = vld [vmem:[#allocation3 + $0x50] sm:$0xf]  ;;  %v2365_v39 = vld [vmem:[#allocation3 + $0x54] sm:$0xf0]  ;;  %v2364_v40 = vld [vmem:[#allocation3 + $0x54] sm:$0xf] }
  0x1c   : > { %794 = vmatpush.bf16.msra.mxu1 %v1964_v28  ;;  %v1956_v41 = vor.u32 %v2365_v39, %v1955_v38  ;;  %v1957_v42 = vld [vmem:[#allocation3 + $0x58] sm:$0xf0]  ;;  %v2011_v43 = vld [vmem:[#allocation3 + $0xc0] sm:$0xf]  ;;  %v2379_v44 = vld [vmem:[#allocation3 + $0xc4] sm:$0xf0] }
  0x1d   : > { %832 = vmatpush.bf16.msra.mxu3 %v1968_v32  ;;  %v1960_v45 = vor.u32 %v2364_v40, %v1957_v42  ;;  %v2012_v46 = vor.u32 %v2379_v44, %v2011_v43  ;;  %v2378_v47 = vld [vmem:[#allocation3 + $0xc4] sm:$0xf]  ;;  %v2013_v48 = vld [vmem:[#allocation3 + $0xc8] sm:$0xf0]  ;;  %481 = vst [vmem:[#allocation2 + $0xc] sm:$0xf] %v2645_v37 }
  0x1e   : > { %851 = vmatpush.bf16.msrb.mxu0 %v2032_v24  ;;  %814 = vmatpush.bf16.msra.mxu2 %v2020_v33  ;;  %v2016_v49 = vor.u32 %v2378_v47, %v2013_v48  ;;  %v1947_v50 = vld [vmem:[#allocation3 + $0x40] sm:$0xf]  ;;  %v2363_v51 = vld [vmem:[#allocation3 + $0x44] sm:$0xf0]  ;;  %v2362_v52 = vld [vmem:[#allocation3 + $0x44] sm:$0xf] }
  0x1f   : > { %v1948_v53 = vor.u32 %v2363_v51, %v1947_v50  ;;  %v1949_v54 = vld [vmem:[#allocation3 + $0x48] sm:$0xf0]  ;;  %v2003_v55 = vld [vmem:[#allocation3 + $0xb0] sm:$0xf]  ;;  %v2377_v56 = vld [vmem:[#allocation3 + $0xb4] sm:$0xf0] }
  0x20   : > { %795 = vmatpush.bf16.msra.mxu1 %v1956_v41  ;;  %v1952_v57 = vor.u32 %v2362_v52, %v1949_v54  ;;  %v2004_v58 = vor.u32 %v2377_v56, %v2003_v55  ;;  %v2376_v59 = vld [vmem:[#allocation3 + $0xb4] sm:$0xf]  ;;  %v2005_v60 = vld [vmem:[#allocation3 + $0xb8] sm:$0xf0]  ;;  %v1939_v62 = vld [vmem:[#allocation3 + $0x30] sm:$0xf] }
  0x21   : > { %833 = vmatpush.bf16.msra.mxu3 %v1960_v45  ;;  %v2008_v61 = vor.u32 %v2376_v59, %v2005_v60  ;;  %v2361_v63 = vld [vmem:[#allocation3 + $0x34] sm:$0xf0]  ;;  %v2360_v0 = vld [vmem:[#allocation3 + $0x34] sm:$0xf]  ;;  %v1941_v2 = vld [vmem:[#allocation3 + $0x38] sm:$0xf0] }
  0x22   : > { %852 = vmatpush.bf16.msrb.mxu0 %v2024_v36  ;;  %815 = vmatpush.bf16.msra.mxu2 %v2012_v46  ;;  %v1940_v1 = vor.u32 %v2361_v63, %v1939_v62  ;;  %v1995_v3 = vld [vmem:[#allocation3 + $0xa0] sm:$0xf]  ;;  %v2375_v4 = vld [vmem:[#allocation3 + $0xa4] sm:$0xf0]  ;;  %v1944_v5 = vor.u32 %v2360_v0, %v1941_v2  ;;  %v2374_v7 = vld [vmem:[#allocation3 + $0xa4] sm:$0xf] }
  0x23   : > { %v1996_v6 = vor.u32 %v2375_v4, %v1995_v3  ;;  %v1997_v8 = vld [vmem:[#allocation3 + $0xa8] sm:$0xf0]  ;;  %v1931_v10 = vld [vmem:[#allocation3 + $0x20] sm:$0xf]  ;;  %v2359_v11 = vld [vmem:[#allocation3 + $0x24] sm:$0xf0] }
  0x24   : > { %796 = vmatpush.bf16.msra.mxu1 %v1948_v53  ;;  %v2000_v9 = vor.u32 %v2374_v7, %v1997_v8  ;;  %v1932_v13 = vor.u32 %v2359_v11, %v1931_v10  ;;  %v1933_v14 = vld [vmem:[#allocation3 + $0x28] sm:$0xf0]  ;;  %v1987_v15 = vld [vmem:[#allocation3 + $0x90] sm:$0xf]  ;;  %v2373_v16 = vld [vmem:[#allocation3 + $0x94] sm:$0xf0] }
  0x25   : > { %834 = vmatpush.bf16.msra.mxu3 %v1952_v57  ;;  %v1988_v18 = vor.u32 %v2373_v16, %v1987_v15  ;;  %v2372_v19 = vld [vmem:[#allocation3 + $0x94] sm:$0xf]  ;;  %v1989_v20 = vld [vmem:[#allocation3 + $0x98] sm:$0xf0]  ;;  %v1923_v22 = vld [vmem:[#allocation3 + $0x10] sm:$0xf] }
  0x26   : > { %853 = vmatpush.bf16.msrb.mxu0 %v2016_v49  ;;  %816 = vmatpush.bf16.msra.mxu2 %v2004_v58  ;;  %v1992_v21 = vor.u32 %v2372_v19, %v1989_v20  ;;  %v2357_v23 = vld [vmem:[#allocation3 + $0x14] sm:$0xf0]  ;;  %v2356_v24 = vld [vmem:[#allocation3 + $0x14] sm:$0xf]  ;;  %v1925_v26 = vld [vmem:[#allocation3 + $0x18] sm:$0xf0] }
  0x27   : > { %v1924_v25 = vor.u32 %v2357_v23, %v1923_v22  ;;  %v1979_v27 = vld [vmem:[#allocation3 + $0x80] sm:$0xf]  ;;  %v2371_v28 = vld [vmem:[#allocation3 + $0x84] sm:$0xf0]  ;;  %v1928_v29 = vor.u32 %v2356_v24, %v1925_v26  ;;  %v2370_v31 = vld [vmem:[#allocation3 + $0x84] sm:$0xf] }
  0x28   : > { %797 = vmatpush.bf16.msra.mxu1 %v1940_v1  ;;  %v1980_v30 = vor.u32 %v2371_v28, %v1979_v27  ;;  %v1981_v32 = vld [vmem:[#allocation3 + $0x88] sm:$0xf0]  ;;  %v1915_v34 = vld [vmem:[#allocation3] sm:$0xf]  ;;  %v2355_v35 = vld [vmem:[#allocation3 + $0x4] sm:$0xf0] }
  0x29   : > { %1904 = vmatmul.msk.bf16.gmra.mxu0 %vm447_vm2, %v2351_v12  ;;  %835 = vmatpush.bf16.msra.mxu3 %v1944_v5  ;;  %v2358_v12 = vld [vmem:[#allocation3 + $0x24] sm:$0xf]  ;;  %v1984_v33 = vor.u32 %v2370_v31, %v1981_v32  ;;  %v1916_v37 = vor.u32 %v2355_v35, %v1915_v34  ;;  %v1917_v38 = vld [vmem:[#allocation3 + $0x8] sm:$0xf0]  ;;  %v2505_v40 = vld [vmem:[%s2930_s2] ss:$0 sm:$0xff] }
  0x2a   : > { %854 = vmatpush.bf16.msrb.mxu0 %v2008_v61  ;;  %817 = vmatpush.bf16.msra.mxu2 %v1996_v6  ;;  %v1936_v17 = vor.u32 %v2358_v12, %v1933_v14  ;;  %v2354_v36 = vld [vmem:[#allocation3 + $0x4] sm:$0xf]  ;;  %v1907_v50 = vld [vmem:[#allocation2] sm:$0x8]  ;;  %vm538_vm3 = vsmask.f32 4352 }
  0x2b   : > { %v1920_v39 = vor.u32 %v2354_v36, %v1917_v38 }
  0x2c   : > { %798 = vmatpush.bf16.msra.mxu1 %v1932_v13 }
  0x2d   : > { %836 = vmatpush.bf16.msra.mxu3 %v1936_v17 }
  0x2e   : > { %855 = vmatpush.bf16.msrb.mxu0 %v2000_v9  ;;  %818 = vmatpush.bf16.msra.mxu2 %v1988_v18 }
  0x30   : > { %799 = vmatpush.bf16.msra.mxu1 %v1924_v25  ;;  %v1911_v25 = vld [vmem:[#allocation2 + $0xc] sm:$0x8] }
  0x31   : > { %837 = vmatpush.bf16.msra.mxu3 %v1928_v29 }
  0x32   : > { %856 = vmatpush.bf16.msrb.mxu0 %v1992_v21  ;;  %819 = vmatpush.bf16.msra.mxu2 %v1980_v30 }
  0x34   : > { %800 = vmatpush.bf16.msra.mxu1 %v1916_v37 }
  0x35   : > { %838 = vmatpush.bf16.msra.mxu3 %v1920_v39 }
  0x36   : > { %857 = vmatpush.bf16.msrb.mxu0 %v1984_v33 }
  0x96   : > { %v470_v41 = vpop.f32.mrf.mxu0 }
  0x97   : > { %v2756_v42 = vadd.f32 %v2505_v40, %v470_v41 }
  0x99   : > { %v482_v43 = vpack.c.bf16 %v2756_v42, %v2756_v42 }
  0x9b   : > { %486 = vst [vmem:[#allocation2 + $0x4] sm:$0xf] %v482_v43  ;;  %v516_v47 = vunpack.c.l.b16 %v482_v43 }
  0x9e   : > { %v472_v44 = vpop.f32.mrf.mxu0 }
  0x9f   : > { %v2760_v45 = vadd.f32 %v2505_v40, %v472_v44 }
  0xa1   : > { %v483_v46 = vpack.c.bf16 %v2760_v45, %v2760_v45 }
  0xa2   : > { %v2352_v51 = vld [vmem:[#allocation2] sm:$0xf0] }
  0xa3   : > { %487 = vst [vmem:[#allocation2 + $0x8] sm:$0xf] %v483_v46  ;;  %v517_v48 = vunpack.c.l.b16 %v483_v46  ;;  %v1908_v55 = vor.u32 %v2352_v51, %v1907_v50 }
  0xa5   : > { %v520_v49 = vpack.c.b16 %v517_v48, %v516_v47  ;;  %v540_v62 = vshrl.u32 %v1908_v55, 16  ;;  %v543_v63 = vshll.u32 %v1908_v55, 16 }
  0xa6   : > { %v475_v52 = vpop.f32.mrf.mxu0 }
  0xa7   : > { %v523_v53 = vshrl.u32 %v520_v49, 16  ;;  %v526_v54 = vshll.u32 %v520_v49, 16  ;;  %v2764_v58 = vadd.f32 %v2505_v40, %v475_v52  ;;  %v542_v9 = vrot.slane %v540_v62, 3  ;;  %v2103_v52 = vld [vmem:[#allocation5 + $0x70] sm:$0xf] }
  0xa8   : > { %v545_v10 = vrot.slane %v543_v63, 4  ;;  %v2097_v63 = vld [vmem:[#allocation5 + $0x68] sm:$0xf0] }
  0xa9   : > { %v525_v56 = vrot.slane %v523_v53, 4  ;;  %v528_v57 = vrot.slane %v526_v54, 5  ;;  %v484_v3 = vpack.c.bf16 %v2764_v58, %v2764_v58  ;;  %v2401_v53 = vld [vmem:[#allocation5 + $0x74] sm:$0xf0]  ;;  %v2400_v54 = vld [vmem:[#allocation5 + $0x74] sm:$0xf] }
  0xaa   : > { %v492_v59 = vld [vmem:[#allocation2 + $0x8] sm:$0xf]  ;;  %v546_v19 = vor.u32 %v545_v10, %v542_v9  ;;  %v2104_v55 = vor.u32 %v2401_v53, %v2103_v52  ;;  %v2395_v9 = vld [vmem:[#allocation5 + $0x44] sm:$0xf0]  ;;  %v2394_v10 = vld [vmem:[#allocation5 + $0x44] sm:$0xf] }
  0xab   : > { %v529_v60 = vor.u32 %v528_v57, %v525_v56  ;;  %v504_v61 = vunpack.c.l.b16 %v492_v59  ;;  %v518_v17 = vunpack.c.l.b16 %v484_v3  ;;  %v2105_v56 = vld [vmem:[#allocation5 + $0x78] sm:$0xf0]  ;;  %v2095_v59 = vld [vmem:[#allocation5 + $0x60] sm:$0xf]  ;;  %v2396_v3 = vld [vmem:[#allocation5 + $0x54] sm:$0xf] }
  0xac   : > { %v2108_v57 = vor.u32 %v2400_v54, %v2105_v56  ;;  %1057 = vmatpush.bf16.msrb.mxu1 %v2104_v55 }
  0xad   : > { %v557_v0 = vshrl.u32 %v529_v60, 16  ;;  %v560_v1 = vshll.u32 %v529_v60, 16  ;;  %v509_v2 = vpack.c.b16 %v504_v61, %v504_v61  ;;  %v2399_v60 = vld [vmem:[#allocation5 + $0x64] sm:$0xf0]  ;;  %v2398_v61 = vld [vmem:[#allocation5 + $0x64] sm:$0xf] }
  0xae   : > { %v477_v4 = vpop.f32.mrf.mxu0  ;;  %1076 = vmatpush.bf16.msrb.mxu2 %v2108_v57  ;;  %v2096_v62 = vor.u32 %v2399_v60, %v2095_v59 }
  0xaf   : > { %v2768_v5 = vadd.f32 %v2505_v40, %v477_v4  ;;  %v559_v6 = vrot.slane %v557_v0, 3  ;;  %v562_v7 = vrot.slane %v560_v1, 4  ;;  %v548_v8 = vshrl.u32 %v509_v2, 16  ;;  %v2087_v1 = vld [vmem:[#allocation5 + $0x50] sm:$0xf] }
  0xb0   : > { %v551_v11 = vshll.u32 %v509_v2, 16  ;;  %v2100_v0 = vor.u32 %v2398_v61, %v2097_v63  ;;  %1058 = vmatpush.bf16.msrb.mxu1 %v2096_v62  ;;  %v2397_v2 = vld [vmem:[#allocation5 + $0x54] sm:$0xf0] }
  0xb1   : > { %v485_v12 = vpack.c.bf16 %v2768_v5, %v2768_v5  ;;  %v2463_v13 = vpack.c.bf16 %v2768_v5, %v2764_v58  ;;  %v563_v14 = vor.u32 %v562_v7, %v559_v6  ;;  %v550_v15 = vrot.slane %v548_v8, 3  ;;  %v2089_v6 = vld [vmem:[#allocation5 + $0x58] sm:$0xf0]  ;;  %v2079_v8 = vld [vmem:[#allocation5 + $0x40] sm:$0xf] }
  0xb2   : > { %v553_v16 = vrot.slane %v551_v11, 4  ;;  %1077 = vmatpush.bf16.msrb.mxu2 %v2100_v0  ;;  %v2088_v4 = vor.u32 %v2397_v2, %v2087_v1  ;;  %v2092_v7 = vor.u32 %v2396_v3, %v2089_v6  ;;  %v2080_v11 = vor.u32 %v2395_v9, %v2079_v8 }
  0xb3   : > { %2470 = vst [vmem:[#allocation2 + $0x10] sm:$0xff] %v2463_v13   ;;  %v519_v18 = vunpack.c.l.b16 %v485_v12  ;;  %820 = vmatmul.bf16.vlgmr.msra.gmra.mxu2 %v563_v14  ;;  %858 = vmatmul.bf16.vlgmr.msrb.gmra.mxu0 %v563_v14  ;;  %v2081_v12 = vld [vmem:[#allocation5 + $0x48] sm:$0xf0]  ;;  %v627_v14 = vld [vmem:[%s2932_s4] sm:$0x3] }
  0xb4   : > { %v554_v20 = vor.u32 %v553_v16, %v550_v15  ;;  %1059 = vmatpush.bf16.msrb.mxu1 %v2088_v4  ;;  %v2084_v13 = vor.u32 %v2394_v10, %v2081_v12  ;;  %v2071_v16 = vld [vmem:[#allocation5 + $0x30] sm:$0xf]  ;;  %v2786_v59 = vperm.slane %v627_v14, 0 }
  0xb5   : > { %v521_v21 = vpack.c.b16 %v519_v18, %v518_v17  ;;  %v2393_v17 = vld [vmem:[#allocation5 + $0x34] sm:$0xf0]  ;;  %v2392_v18 = vld [vmem:[#allocation5 + $0x34] sm:$0xf] }
  0xb6   : > { %v555_v22 = vsel %vm538_vm3, %v546_v19, %v554_v20  ;;  %1078 = vmatpush.bf16.msrb.mxu2 %v2092_v7  ;;  %v2779_v19 = vperm.slane %v627_v14, 1  ;;  %v2072_v20 = vor.u32 %v2393_v17, %v2071_v16 }
  0xb7   : > { %801 = vmatmul.bf16.vlgmr.msra.gmra.mxu1 %v555_v22  ;;  %839 = vmatmul.bf16.vlgmr.msra.gmra.mxu3 %v555_v22  ;;  %v531_v23 = vshrl.u32 %v521_v21, 16  ;;  %v534_v24 = vshll.u32 %v521_v21, 16  ;;  %v2073_v21 = vld [vmem:[#allocation5 + $0x38] sm:$0xf0] }
  0xb8   : > { %1060 = vmatpush.bf16.msrb.mxu1 %v2080_v11  ;;  %v2076_v22 = vor.u32 %v2392_v18, %v2073_v21 }
  0xb9   : > { %v533_v26 = vrot.slane %v531_v23, 4  ;;  %v536_v27 = vrot.slane %v534_v24, 5  ;;  %v2063_v24 = vld [vmem:[#allocation5 + $0x20] sm:$0xf] }
  0xba   : > { %v2353_v28 = vld [vmem:[#allocation2 + $0xc] sm:$0xf0]  ;;  %v495_v29 = vld [vmem:[#allocation2 + $0x14] sm:$0xf]  ;;  %1079 = vmatpush.bf16.msrb.mxu2 %v2084_v13 }
  0xbb   : > { %v537_v30 = vor.u32 %v536_v27, %v533_v26  ;;  %v507_v31 = vunpack.c.l.b16 %v495_v29  ;;  %v1912_v32 = vor.u32 %v2353_v28, %v1911_v25  ;;  %v2391_v25 = vld [vmem:[#allocation5 + $0x24] sm:$0xf0]  ;;  %v2390_v26 = vld [vmem:[#allocation5 + $0x24] sm:$0xf]  ;;  %v2065_v29 = vld [vmem:[#allocation5 + $0x28] sm:$0xf0] }
  0xbc   : > { %1061 = vmatpush.bf16.msrb.mxu1 %v2072_v20  ;;  %v2064_v28 = vor.u32 %v2391_v25, %v2063_v24 }
  0xbd   : > { %v583_v33 = vshrl.u32 %v537_v30, 16  ;;  %v586_v34 = vshll.u32 %v537_v30, 16  ;;  %v511_v35 = vpack.c.b16 %v507_v31, %v507_v31  ;;  %v566_v36 = vshrl.u32 %v1912_v32, 16 }
  0xbe   : > { %v569_v37 = vshll.u32 %v1912_v32, 16  ;;  %1080 = vmatpush.bf16.msrb.mxu2 %v2076_v22  ;;  %v2068_v30 = vor.u32 %v2390_v26, %v2065_v29  ;;  %v2055_v32 = vld [vmem:[#allocation5 + $0x10] sm:$0xf] }
  0xbf   : > { %v585_v38 = vrot.slane %v583_v33, 3  ;;  %v588_v39 = vrot.slane %v586_v34, 4  ;;  %v574_v40 = vshrl.u32 %v511_v35, 16  ;;  %v568_v41 = vrot.slane %v566_v36, 3  ;;  %v2389_v33 = vld [vmem:[#allocation5 + $0x14] sm:$0xf0] }
  0xc0   : > { %v571_v43 = vrot.slane %v569_v37, 4  ;;  %v577_v44 = vshll.u32 %v511_v35, 16  ;;  %1062 = vmatpush.bf16.msrb.mxu1 %v2064_v28  ;;  %v2388_v34 = vld [vmem:[#allocation5 + $0x14] sm:$0xf]  ;;  %v2056_v36 = vor.u32 %v2389_v33, %v2055_v32  ;;  %v2057_v37 = vld [vmem:[#allocation5 + $0x18] sm:$0xf0] }
  0xc1   : > { %v589_v46 = vor.u32 %v588_v39, %v585_v38  ;;  %v576_v47 = vrot.slane %v574_v40, 3  ;;  %v2060_v39 = vor.u32 %v2388_v34, %v2057_v37  ;;  %v2240_v22 = vld [vmem:[#allocation3 + $0x1f0] sm:$0xf]  ;;  %v2242_v28 = vld [vmem:[#allocation3 + $0x1f8] sm:$0xf0] }
  0xc2   : > { %v579_v48 = vrot.slane %v577_v44, 4  ;;  %v572_v49 = vor.u32 %v571_v43, %v568_v41  ;;  %1081 = vmatpush.bf16.msrb.mxu2 %v2068_v30  ;;  %v2047_v41 = vld [vmem:[#allocation5] sm:$0xf]  ;;  %v2387_v43 = vld [vmem:[#allocation5 + $0x4] sm:$0xf0] }
  0xc3   : > { %825 = vmatmul.bf16.gmra.mxu2 %v589_v46  ;;  %863 = vmatmul.bf16.gmra.mxu0 %v589_v46  ;;  %v2386_v44 = vld [vmem:[#allocation5 + $0x4] sm:$0xf]  ;;  %v2433_v32 = vld [vmem:[#allocation3 + $0x1e4] sm:$0xf0]  ;;  %v2234_v34 = vld [vmem:[#allocation3 + $0x1e8] sm:$0xf0] }
  0xc4   : > { %v580_v50 = vor.u32 %v579_v48, %v576_v47  ;;  %1063 = vmatpush.bf16.msrb.mxu1 %v2056_v36  ;;  %v2048_v48 = vor.u32 %v2387_v43, %v2047_v41  ;;  %v2432_v33 = vld [vmem:[#allocation3 + $0x1e4] sm:$0xf]  ;;  %v2176_v41 = vld [vmem:[#allocation3 + $0x170] sm:$0xf] }
  0xc6   : > { %v581_v51 = vsel %vm538_vm3, %v572_v49, %v580_v50  ;;  %1082 = vmatpush.bf16.msrb.mxu2 %v2060_v39  ;;  %v2049_v49 = vld [vmem:[#allocation5 + $0x8] sm:$0xf0] }
  0xc7   : > { %806 = vmatmul.bf16.gmra.mxu1 %v581_v51  ;;  %844 = vmatmul.bf16.gmra.mxu3 %v581_v51  ;;  %v2052_v50 = vor.u32 %v2386_v44, %v2049_v49 }
  0xc8   : > { %1064 = vmatpush.bf16.msrb.mxu1 %v2048_v48  ;;  %v2419_v48 = vld [vmem:[#allocation3 + $0x174] sm:$0xf0] }
  0xca   : > { %1083 = vmatpush.bf16.msrb.mxu2 %v2052_v50 }
 0x130   : > { %v859_v15 = vpop.f32.mrf.mxu0 }
 0x134   : > { %v802_v46 = vpop.f32.mrf.mxu1 }
 0x135   : > { %v803_v0 = vadd.f32 %v802_v46, %v2786_v59 }
 0x136   : > { %v821_v53 = vpop.f32.mrf.mxu2 }
 0x137   : > { %v822_v8 = vadd.f32 %v821_v53, %v803_v0 }
 0x138   : > { %v861_v38 = vpop.f32.mrf.mxu0 }
 0x13a   : > { %v840_v23 = vpop.f32.mrf.mxu3 }
 0x13b   : > { %v841_v27 = vadd.f32 %v840_v23, %v2779_v19  ;;  %v2435_v23 = vld [vmem:[#allocation3 + $0x1f4] sm:$0xf0] }
 0x13c   : > { %v804_v61 = vpop.f32.mrf.mxu1  ;;  %v2241_v26 = vor.u32 %v2435_v23, %v2240_v22 }
 0x13d   : > { %v860_v31 = vadd.f32 %v859_v15, %v841_v27  ;;  %v805_v9 = vadd.f32 %v804_v61, %v2786_v59  ;;  %v2434_v27 = vld [vmem:[#allocation3 + $0x1f4] sm:$0xf] }
 0x13e   : > { %v823_v6 = vpop.f32.mrf.mxu2  ;;  %1375 = vmatpush.bf16.msra.mxu0 %v2241_v26  ;;  %v2245_v39 = vor.u32 %v2434_v27, %v2242_v28 }
 0x13f   : > { %v2041_v35 = vmul.f32 -1.442695, %v860_v31  ;;  %v824_v18 = vadd.f32 %v823_v6, %v805_v9  ;;  %v2232_v31 = vld [vmem:[#allocation3 + $0x1e0] sm:$0xf] }
 0x140   : > { %v864_v56 = vpop.f32.mrf.mxu0  ;;  %v2233_v46 = vor.u32 %v2433_v32, %v2232_v31  ;;  %1413 = vmatpush.bf16.msra.mxu2 %v2245_v39 }
 0x141   : > { %2508 = vpow2.f32 %v2041_v35  ;;  %v2418_v35 = vld [vmem:[#allocation3 + $0x174] sm:$0xf] }
 0x142   : > { %v842_v40 = vpop.f32.mrf.mxu3  ;;  %1376 = vmatpush.bf16.msra.mxu0 %v2233_v46  ;;  %v2417_v46 = vld [vmem:[#allocation3 + $0x164] sm:$0xf0] }
 0x143   : > { %v843_v47 = vadd.f32 %v842_v40, %v2779_v19  ;;  %v2178_v40 = vld [vmem:[#allocation3 + $0x178] sm:$0xf0] }
 0x144   : > { %v807_v20 = vpop.f32.mrf.mxu1 }
 0x145   : > { %v862_v51 = vadd.f32 %v861_v38, %v843_v47  ;;  %v2181_v47 = vor.u32 %v2418_v35, %v2178_v40  ;;  %v2431_v35 = vld [vmem:[#allocation3 + $0x1d4] sm:$0xf0]  ;;  %v2416_v40 = vld [vmem:[#allocation3 + $0x164] sm:$0xf] }
 0x146   : > { %v826_v36 = vpop.f32.mrf.mxu2 }
 0x147   : > { %v2509_v52 = vpop.eup %2508  ;;  %v2042_v54 = vmul.f32 -1.442695, %v862_v51  ;;  %v2237_v51 = vor.u32 %v2432_v33, %v2234_v34  ;;  %1394 = vmatpush.bf16.msra.mxu1 %v2181_v47  ;;  %v2224_v34 = vld [vmem:[#allocation3 + $0x1d0] sm:$0xf]  ;;  %v2216_v47 = vld [vmem:[#allocation3 + $0x1c0] sm:$0xf] }
 0x148   : > { %v2783_v55 = vadd.f32 1.0, %v2509_v52  ;;  %v866_v12 = vpop.f32.mrf.mxu0  ;;  %v2177_v52 = vor.u32 %v2419_v48, %v2176_v41  ;;  %v2225_v37 = vor.u32 %v2431_v35, %v2224_v34  ;;  %v2170_v41 = vld [vmem:[#allocation3 + $0x168] sm:$0xf0]  ;;  %v2429_v48 = vld [vmem:[#allocation3 + $0x1c4] sm:$0xf0] }
 0x149   : > { %2510 = vpow2.f32 %v2042_v54  ;;  %1414 = vmatpush.bf16.msra.mxu2 %v2237_v51  ;;  %v2428_v51 = vld [vmem:[#allocation3 + $0x1c4] sm:$0xf]  ;;  %v2421_v34 = vld [vmem:[#allocation3 + $0x184] sm:$0xf0] }
 0x14a   : > { %2512 = vrcp.f32 %v2783_v55  ;;  %v845_v57 = vpop.f32.mrf.mxu3  ;;  %v898_v15 = vand.u32 2147483647, %v2783_v55  ;;  %v900_v16 = vand.u32 2147483648, %v2783_v55  ;;  %vm894_vm5 = vweird.f32 %v2783_v55  ;;  %1356 = vmatpush.bf16.msrb.mxu3 %v2177_v52  ;;  %1377 = vmatpush.bf16.msra.mxu0 %v2225_v37  ;;  %v2218_v52 = vld [vmem:[#allocation3 + $0x1c8] sm:$0xf0] }
 0x14b   : > { %v846_v60 = vadd.f32 %v845_v57, %v2779_v19  ;;  %v2420_v37 = vld [vmem:[#allocation3 + $0x184] sm:$0xf] }
 0x14c   : > { %v901_v53 = vor.u32 1.1754944e-38, %v900_v16  ;;  %vm899_vm8 = vcmp.eq.f32.partialorder %v898_v15, 8.507059e+37 }
 0x14d   : > { %v865_v62 = vadd.f32 %v864_v56, %v846_v60 }
 0x14e   : > { %v828_v9 = vpop.f32.mrf.mxu2 }
 0x14f   : > { %v2511_v63 = vpop.eup %2510  ;;  %v2043_v1 = vmul.f32 -1.442695, %v865_v62 }
 0x150   : > { %v2790_v2 = vpop.eup %2512  ;;  %v2792_v3 = vadd.f32 1.0, %v2511_v63  ;;  %v809_v63 = vpop.f32.mrf.mxu1 }
 0x151   : > { %v890_v4 = vmul.f32 %v2790_v2, %v2783_v55  ;;  %2514 = vpow2.f32 %v2043_v1  ;;  %vm895_vm4 = vweird.f32 %v2790_v2 }
 0x152   : > { %2516 = vrcp.f32 %v2792_v3  ;;  %v847_v7 = vpop.f32.mrf.mxu3  ;;  %v913_v30 = vand.u32 2147483647, %v2792_v3  ;;  %vm2812_vm6 = vmor %vm894_vm5, %vm895_vm4  ;;  %v915_v44 = vand.u32 2147483648, %v2792_v3  ;;  %vm909_vm9 = vweird.f32 %v2792_v3 }
 0x153   : > { %v848_v10 = vadd.f32 %v847_v7, %v2779_v19  ;;  %v891_v11 = vsub.f32 1.0, %v890_v4  ;;  %2518 = vtanh.f32 %v822_v8  ;;  %v808_v4 = vadd.f32 %v807_v20, %v2786_v59 }
 0x154   : > { %v916_v61 = vor.u32 1.1754944e-38, %v915_v44  ;;  %vm914_vm11 = vcmp.eq.f32.partialorder %v913_v30, 8.507059e+37  ;;  %v810_v8 = vadd.f32 %v809_v63, %v2786_v59  ;;  %v2173_v44 = vor.u32 %v2416_v40, %v2170_v41  ;;  %v2406_v40 = vld [vmem:[#allocation3 + $0x114] sm:$0xf]  ;;  %v2130_v41 = vld [vmem:[#allocation3 + $0x118] sm:$0xf0] }
 0x155   : > { %v867_v13 = vadd.f32 %v866_v12, %v848_v10  ;;  %v892_v14 = vmul.f32 %v2790_v2, %v891_v11  ;;  %v827_v12 = vadd.f32 %v826_v36, %v808_v4  ;;  %v2430_v36 = vld [vmem:[#allocation3 + $0x1d4] sm:$0xf]  ;;  %vm1141_vm4 = vcmask 1044480  }
 0x156   : > { %1395 = vmatpush.bf16.msra.mxu1 %v2173_v44  ;;  %v2133_v44 = vor.u32 %v2406_v40, %v2130_v41  ;;  %v2442_v41 = vld [vmem:[#allocation5 + $0xe4] sm:$0xf] }
 0x157   : > { %v2515_v17 = vpop.eup %2514  ;;  %v2044_v21 = vmul.f32 -1.442695, %v867_v13  ;;  %v893_v19 = vadd.f32 %v2790_v2, %v892_v14  ;;  %v829_v14 = vadd.f32 %v828_v9, %v810_v8  ;;  %v2413_v9 = vld [vmem:[#allocation3 + $0x144] sm:$0xf0] }
 0x158   : > { %v2517_v24 = vpop.eup %2516  ;;  %v2802_v25 = vadd.f32 1.0, %v2515_v17 }
 0x159   : > { %v905_v29 = vmul.f32 %v2517_v24, %v2792_v3  ;;  %2520 = vpow2.f32 %v2044_v21  ;;  %v897_v43 = vsel %vm2812_vm6, %v2790_v2, %v893_v19  ;;  %v2519_v49 = vpop.eup %2518  ;;  %vm910_vm7 = vweird.f32 %v2517_v24 }
 0x15a   : > { %2522 = vrcp.f32 %v2802_v25  ;;  %v902_v60 = vsel %vm899_vm8, %v901_v53, %v897_v43  ;;  %vm911_vm10 = vmor %vm909_vm9, %vm910_vm7  ;;  %v930_v17 = vand.u32 2147483648, %v2802_v25  ;;  %vm924_vm13 = vweird.f32 %v2802_v25  ;;  %v2168_v43 = vld [vmem:[#allocation3 + $0x160] sm:$0xf] }
 0x15b   : > { %2524 = vtanh.f32 %v824_v18  ;;  %v906_v38 = vsub.f32 1.0, %v905_v29  ;;  %v949_v6 = vmul.f32 %v2519_v49, %v902_v60  ;;  %v928_v18 = vand.u32 2147483647, %v2802_v25  ;;  %v2415_v60 = vld [vmem:[#allocation3 + $0x154] sm:$0xf0] }
 0x15c   : > { %v2169_v49 = vor.u32 %v2417_v46, %v2168_v43  ;;  %v2221_v53 = vor.u32 %v2428_v51, %v2218_v52  ;;  %v2128_v43 = vld [vmem:[#allocation3 + $0x110] sm:$0xf]  ;;  %v2407_v46 = vld [vmem:[#allocation3 + $0x114] sm:$0xf0]  ;;  %v2831_v51 = vld [vmem:[%s2934_s6] sm:$0x3] }
 0x15d   : > { %v907_v50 = vmul.f32 %v2517_v24, %v906_v38  ;;  %vm929_vm0 = vcmp.eq.f32.partialorder %v928_v18, 8.507059e+37  ;;  %v2226_v38 = vld [vmem:[#allocation3 + $0x1d8] sm:$0xf0] }
 0x15e   : > { %v2229_v39 = vor.u32 %v2430_v36, %v2226_v38  ;;  %1357 = vmatpush.bf16.msrb.mxu3 %v2169_v49  ;;  %v2146_v18 = vld [vmem:[#allocation3 + $0x138] sm:$0xf0]  ;;  %v2186_v38 = vld [vmem:[#allocation3 + $0x188] sm:$0xf0] }
 0x15f   : > { %v2521_v54 = vpop.eup %2520  ;;  %v908_v55 = vadd.f32 %v2517_v24, %v907_v50  ;;  %v2217_v50 = vor.u32 %v2429_v48, %v2216_v47  ;;  %v2129_v47 = vor.u32 %v2407_v46, %v2128_v43  ;;  %v2404_v48 = vld [vmem:[#allocation3 + $0x104] sm:$0xf]  ;;  %v2122_v49 = vld [vmem:[#allocation3 + $0x108] sm:$0xf0]  ;;  %v2441_v46 = vld [vmem:[#allocation5 + $0xd4] sm:$0xf] }
 0x160   : > { %v2523_v56 = vpop.eup %2522  ;;  %v888_v57 = vadd.f32 1.0, %v2521_v54  ;;  %1415 = vmatpush.bf16.msra.mxu2 %v2229_v39  ;;  %v2414_v54 = vld [vmem:[#allocation3 + $0x154] sm:$0xf]  ;;  %v2189_v39 = vor.u32 %v2420_v37, %v2186_v38  ;;  %v2125_v52 = vor.u32 %v2404_v48, %v2122_v49  ;;  %v2275_v43 = vld [vmem:[#allocation5 + $0xe8] sm:$0xf0] }
 0x161   : > { %v2525_v62 = vpop.eup %2524  ;;  %v912_v0 = vsel %vm911_vm10, %v2517_v24, %v908_v55  ;;  %v920_v1 = vmul.f32 %v2523_v56, %v2802_v25  ;;  %vm925_vm12 = vweird.f32 %v2523_v56  ;;  %v931_v24 = vor.u32 1.1754944e-38, %v930_v17  ;;  %1378 = vmatpush.bf16.msra.mxu0 %v2217_v50  ;;  %v2162_v55 = vld [vmem:[#allocation3 + $0x158] sm:$0xf0]  ;;  %v2410_v17 = vld [vmem:[#allocation3 + $0x134] sm:$0xf] }
 0x162   : > { %2526 = vrcp.f32 %v888_v57  ;;  %v917_v2 = vsel %vm914_vm11, %v916_v61, %v912_v0  ;;  %vm926_vm14 = vmor %vm924_vm13, %vm925_vm12  ;;  %v945_v59 = vand.u32 2147483648, %v888_v57  ;;  %v943_v23 = vand.u32 2147483647, %v888_v57  ;;  %v2208_v61 = vld [vmem:[#allocation3 + $0x1b0] sm:$0xf] }
 0x163   : > { %v950_v3 = vmul.f32 %v2525_v62, %v917_v2  ;;  %v921_v7 = vsub.f32 1.0, %v920_v1  ;;  %2528 = vtanh.f32 %v827_v12  ;;  %vm939_vm1 = vweird.f32 %v888_v57  ;;  %v2427_v62 = vld [vmem:[#allocation3 + $0x1b4] sm:$0xf0]  ;;  %v2426_v1 = vld [vmem:[#allocation3 + $0x1b4] sm:$0xf] }
 0x164   : > { %2530 = vtanh.f32 %v829_v14  ;;  %v946_v27 = vor.u32 1.1754944e-38, %v945_v59  ;;  %vm944_vm3 = vcmp.eq.f32.partialorder %v943_v23, 8.507059e+37  ;;  %1416 = vmatpush.bf16.msra.mxu2 %v2221_v53  ;;  %v2209_v0 = vor.u32 %v2427_v62, %v2208_v61  ;;  %v2210_v2 = vld [vmem:[#allocation3 + $0x1b8] sm:$0xf0]  ;;  %v2424_v14 = vld [vmem:[#allocation3 + $0x1a4] sm:$0xf] }
 0x165   : > { %v953_v10 = vpack.c.bf16 %v950_v3, %v949_v6  ;;  %v922_v11 = vmul.f32 %v2523_v56, %v921_v7  ;;  %v2213_v4 = vor.u32 %v2426_v1, %v2210_v2  ;;  %v2412_v6 = vld [vmem:[#allocation3 + $0x144] sm:$0xf]  ;;  %v2154_v3 = vld [vmem:[#allocation3 + $0x148] sm:$0xf0]  ;;  %v2152_v7 = vld [vmem:[#allocation3 + $0x140] sm:$0xf]  ;;  %v2149_v59 = vor.u32 %v2410_v17, %v2146_v18 }
 0x166   : > { %1379 = vmatpush.bf16.msra.mxu0 %v2209_v0  ;;  %v2157_v8 = vor.u32 %v2412_v6, %v2154_v3  ;;  %v2153_v12 = vor.u32 %v2413_v9, %v2152_v7  ;;  %v2120_v50 = vld [vmem:[#allocation3 + $0x100] sm:$0xf]  ;;  %v2405_v53 = vld [vmem:[#allocation3 + $0x104] sm:$0xf0]  ;;  %v2443_v38 = vld [vmem:[#allocation5 + $0xf4] sm:$0xf] }
 0x167   : > { %1065 = vmatmul.bf16.vlgmr.msrb.gmra.mxu1 %v953_v10  ;;  %1084 = vmatmul.bf16.vlgmr.msrb.gmra.mxu2 %v953_v10  ;;  %v923_v15 = vadd.f32 %v2523_v56, %v922_v11  ;;  %v2200_v10 = vld [vmem:[#allocation3 + $0x1a0] sm:$0xf]  ;;  %v2425_v11 = vld [vmem:[#allocation3 + $0x1a4] sm:$0xf0] }
 0x168   : > { %v2527_v13 = vpop.eup %2526  ;;  %1417 = vmatpush.bf16.msra.mxu2 %v2213_v4 }
 0x169   : > { %v935_v16 = vmul.f32 %v2527_v13, %v888_v57  ;;  %v927_v21 = vsel %vm926_vm14, %v2523_v56, %v923_v15  ;;  %vm940_vm15 = vweird.f32 %v2527_v13  ;;  %v2529_v28 = vpop.eup %2528  ;;  %v2160_v56 = vld [vmem:[#allocation3 + $0x150] sm:$0xf]  ;;  %v2165_v57 = vor.u32 %v2414_v54, %v2162_v55  ;;  %v2202_v15 = vld [vmem:[#allocation3 + $0x1a8] sm:$0xf0] }
 0x16a   : > { %v932_v26 = vsel %vm929_vm0, %v931_v24, %v927_v21  ;;  %vm941_vm2 = vmor %vm939_vm1, %vm940_vm15  ;;  %v2531_v30 = vpop.eup %2530  ;;  %v2161_v63 = vor.u32 %v2415_v60, %v2160_v56  ;;  %v2411_v21 = vld [vmem:[#allocation3 + $0x134] sm:$0xf0]  ;;  %v2121_v54 = vor.u32 %v2405_v53, %v2120_v50  ;;  %v973_v55 = vperm.slane %v2831_v51, 0  ;;  %v2440_v50 = vld [vmem:[#allocation5 + $0xc4] sm:$0xf] }
 0x16b   : > { %v936_v20 = vsub.f32 1.0, %v935_v16  ;;  %v951_v31 = vmul.f32 %v2529_v28, %v932_v26  ;;  %1396 = vmatpush.bf16.msra.mxu1 %v2165_v57  ;;  %v2205_v16 = vor.u32 %v2424_v14, %v2202_v15  ;;  %v2423_v24 = vld [vmem:[#allocation3 + $0x194] sm:$0xf0]  ;;  %v2194_v26 = vld [vmem:[#allocation3 + $0x198] sm:$0xf0] }
 0x16c   : > { %1358 = vmatpush.bf16.msrb.mxu3 %v2161_v63 }
 0x16d   : > { %v937_v22 = vmul.f32 %v2527_v13, %v936_v20  ;;  %v2144_v20 = vld [vmem:[#allocation3 + $0x130] sm:$0xf]  ;;  %1418 = vmatpush.bf16.msra.mxu2 %v2205_v16 }
 0x16e   : > { %v2145_v23 = vor.u32 %v2411_v21, %v2144_v20 }
 0x16f   : > { %v938_v19 = vadd.f32 %v2527_v13, %v937_v22  ;;  %1397 = vmatpush.bf16.msra.mxu1 %v2157_v8  ;;  %v2192_v22 = vld [vmem:[#allocation3 + $0x190] sm:$0xf] }
 0x170   : > { %1359 = vmatpush.bf16.msrb.mxu3 %v2153_v12 }
 0x171   : > { %v942_v29 = vsel %vm941_vm2, %v2527_v13, %v938_v19  ;;  %v2201_v13 = vor.u32 %v2425_v11, %v2200_v10  ;;  %v2422_v19 = vld [vmem:[#allocation3 + $0x194] sm:$0xf]  ;;  %v2111_v11 = vld [vmem:[#allocation2] sm:$0x8] }
 0x172   : > { %v947_v25 = vsel %vm944_vm3, %v946_v27, %v942_v29  ;;  %v2193_v27 = vor.u32 %v2423_v24, %v2192_v22  ;;  %v2197_v28 = vor.u32 %v2422_v19, %v2194_v26  ;;  %v2408_v29 = vld [vmem:[#allocation3 + $0x124] sm:$0xf] }
 0x173   : > { %v952_v32 = vmul.f32 %v2531_v30, %v947_v25  ;;  %1380 = vmatpush.bf16.msra.mxu0 %v2201_v13  ;;  %1398 = vmatpush.bf16.msra.mxu1 %v2149_v59  ;;  %v2138_v30 = vld [vmem:[#allocation3 + $0x128] sm:$0xf0]  ;;  %v2136_v25 = vld [vmem:[#allocation3 + $0x120] sm:$0xf] }
 0x174   : > { %1360 = vmatpush.bf16.msrb.mxu3 %v2145_v23  ;;  %1419 = vmatpush.bf16.msra.mxu2 %v2197_v28 }
 0x175   : > { %v954_v33 = vpack.c.bf16 %v952_v32, %v951_v31  ;;  %v2141_v31 = vor.u32 %v2408_v29, %v2138_v30  ;;  %v2409_v32 = vld [vmem:[#allocation3 + $0x124] sm:$0xf0]  ;;  %v2115_v30 = vld [vmem:[#allocation2 + $0xc] sm:$0x8] }
 0x176   : > { %v2137_v35 = vor.u32 %v2409_v32, %v2136_v25 }
 0x177   : > { %1070 = vmatmul.bf16.gmra.mxu1 %v954_v33  ;;  %1088 = vmatmul.bf16.gmra.mxu2 %v954_v33  ;;  %v2184_v33 = vld [vmem:[#allocation3 + $0x180] sm:$0xf] }
 0x178   : > { %1381 = vmatpush.bf16.msra.mxu0 %v2193_v27  ;;  %v2185_v36 = vor.u32 %v2421_v34, %v2184_v33  ;;  %1399 = vmatpush.bf16.msra.mxu1 %v2141_v31 }
 0x179   : > { %1361 = vmatpush.bf16.msrb.mxu3 %v2137_v35  ;;  %1420 = vmatpush.bf16.msra.mxu2 %v2189_v39  ;;  %v2279_v39 = vld [vmem:[#allocation5 + $0xf8] sm:$0xf0] }
 0x17a   : > { %v2282_v40 = vor.u32 %v2443_v38, %v2279_v39 }
 0x17c   : > { %1382 = vmatpush.bf16.msra.mxu0 %v2185_v36  ;;  %1400 = vmatpush.bf16.msra.mxu1 %v2133_v44  ;;  %v2278_v44 = vor.u32 %v2442_v41, %v2275_v43  ;;  %v2451_v41 = vld [vmem:[%s2935_s7 + $0x38] sm:$0xff] }
 0x17d   : > { %1362 = vmatpush.bf16.msrb.mxu3 %v2129_v47  ;;  %v2271_v47 = vld [vmem:[#allocation5 + $0xd8] sm:$0xf0] }
 0x17e   : > { %v2274_v48 = vor.u32 %v2441_v46, %v2271_v47 }
 0x180   : > { %1401 = vmatpush.bf16.msra.mxu1 %v2125_v52  ;;  %v2267_v52 = vld [vmem:[#allocation5 + $0xc8] sm:$0xf0]  ;;  %1676 = vmatpush.bf16.msrb.mxu0 %v2451_v41  ;;  %v2447_v41 = vld [vmem:[%s2935_s7 + $0x18] sm:$0xff] }
 0x181   : > { %1363 = vmatpush.bf16.msrb.mxu3 %v2121_v54  ;;  %v2270_v53 = vor.u32 %v2440_v50, %v2267_v52  ;;  %v2117_v54 = vld [vmem:[%s2932_s4 + $0x2] sm:$0x3] }
 0x185   : > { %1588 = vmatpush.bf16.msra.mxu3 %v2282_v40 }
 0x189   : > { %1589 = vmatpush.bf16.msra.mxu3 %v2278_v44 }
 0x18d   : > { %1590 = vmatpush.bf16.msra.mxu3 %v2274_v48 }
 0x191   : > { %1591 = vmatpush.bf16.msra.mxu3 %v2270_v53 }
 0x1e4   : > { %v1066_v56 = vpop.f32.mrf.mxu1 }
 0x1e5   : > { %v1067_v57 = vadd.f32 %v1066_v56, %v973_v55  ;;  %v2263_v56 = vld [vmem:[#allocation5 + $0xb8] sm:$0xf0] }
 0x1e7   : > { %v1093_v60 = vadd.f32 %v1067_v57, %v2756_v42  ;;  %v1193_v57 = vperm.slane %v2117_v54, 1 }
 0x1e9   : > { %v1099_v61 = vpack.c.bf16 %v1093_v60, %v1093_v60 }
 0x1ea   : > { %v1085_v62 = vpop.f32.mrf.mxu2 }
 0x1eb   : > { %1103 = vst [vmem:[#allocation2 + $0x4] sm:$0xf] %v1099_v61  ;;  %v1133_v6 = vunpack.c.l.b16 %v1099_v61 }
 0x1ec   : > { %v1068_v63 = vpop.f32.mrf.mxu1 }
 0x1ed   : > { %v1069_v0 = vadd.f32 %v1068_v63, %v973_v55  ;;  %v2438_v63 = vld [vmem:[#allocation5 + $0xa4] sm:$0xf] }
 0x1ef   : > { %v1094_v1 = vadd.f32 %v1069_v0, %v2760_v45  ;;  %v2259_v0 = vld [vmem:[#allocation5 + $0xa8] sm:$0xf0] }
 0x1f1   : > { %v1100_v2 = vpack.c.bf16 %v1094_v1, %v1094_v1 }
 0x1f2   : > { %v2836_v4 = vpop.f32.mrf.mxu2  ;;  %v2402_v12 = vld [vmem:[#allocation2] sm:$0xf0] }
 0x1f3   : > { %1104 = vst [vmem:[#allocation2 + $0x8] sm:$0xf] %v1100_v2  ;;  %v1134_v3 = vunpack.c.l.b16 %v1100_v2  ;;  %v2112_v16 = vor.u32 %v2402_v12, %v2111_v11  ;;  %v2262_v2 = vor.u32 %v2438_v63, %v2259_v0  ;;  %v2436_v12 = vld [vmem:[#allocation5 + $0x84] sm:$0xf] }
 0x1f4   : > { %v1071_v7 = vpop.f32.mrf.mxu1 }
 0x1f5   : > { %v1137_v8 = vpack.c.b16 %v1134_v3, %v1133_v6  ;;  %v1072_v10 = vadd.f32 %v1071_v7, %v973_v55  ;;  %v1142_v22 = vrot.slane %v2112_v16, 3  ;;  %v2437_v3 = vld [vmem:[#allocation5 + $0x94] sm:$0xf]  ;;  %v2255_v7 = vld [vmem:[#allocation5 + $0x98] sm:$0xf0] }
 0x1f7   : > { %v1139_v9 = vrot.slane %v1137_v8, 5  ;;  %v1095_v15 = vadd.f32 %v1072_v10, %v2764_v58 }
 0x1f9   : > { %v1145_v42 = vrot.slane %v1139_v9, 3  ;;  %v1101_v59 = vpack.c.bf16 %v1095_v15, %v1095_v15  ;;  %v2258_v9 = vor.u32 %v2437_v3, %v2255_v7 }
 0x1fa   : > { %v1089_v13 = vpop.f32.mrf.mxu2  ;;  %v1109_v14 = vld [vmem:[#allocation2 + $0x8] sm:$0x7] }
 0x1fb   : > { %1383 = vmatmul.bf16.vlgmr.msra.gmra.mxu0 %v1145_v42  ;;  %1421 = vmatmul.bf16.vlgmr.msra.gmra.mxu2 %v1145_v42  ;;  %v1121_v45 = vunpack.c.l.b16 %v1109_v14  ;;  %v1135_v58 = vunpack.c.l.b16 %v1101_v59  ;;  %v2251_v42 = vld [vmem:[#allocation5 + $0x88] sm:$0xf0] }
 0x1fc   : > { %v1073_v17 = vpop.f32.mrf.mxu1 }
 0x1fd   : > { %v1074_v18 = vadd.f32 %v1073_v17, %v973_v55  ;;  %v1126_v20 = vpack.c.b16 %v1121_v45, %v1121_v45  ;;  %v2439_v55 = vld [vmem:[#allocation5 + $0xb4] sm:$0xf] }
 0x1fe   : > { %v2266_v60 = vor.u32 %v2439_v55, %v2263_v56 }
 0x1ff   : > { %v1096_v21 = vadd.f32 %v1074_v18, %v2768_v5  ;;  %v1143_v23 = vrot.slane %v1126_v20, 3 }
 0x200   : > { %1592 = vmatpush.bf16.msra.mxu3 %v2266_v60 }
 0x201   : > { %v1102_v24 = vpack.c.bf16 %v1096_v21, %v1096_v21  ;;  %v2468_v19 = vpack.c.bf16 %v1096_v21, %v1095_v15  ;;  %v1144_v26 = vsel %vm1141_vm4, %v1142_v22, %v1143_v23  ;;  %v2254_v15 = vor.u32 %v2436_v12, %v2251_v42 }
 0x202   : > { %1364 = vmatmul.bf16.vlgmr.msrb.gmra.mxu3 %v1144_v26  ;;  %1402 = vmatmul.bf16.vlgmr.msra.gmra.mxu1 %v1144_v26  ;;  %v2842_v49 = vpop.f32.mrf.mxu2  ;;  %v2847_v26 = vperm.slane %v2117_v54, 0 }
 0x203   : > { %2471 = vst [vmem:[#allocation2 + $0x10] sm:$0xff] %v2468_v19   ;;  %v1136_v27 = vunpack.c.l.b16 %v1102_v24 }
 0x204   : > { %1593 = vmatpush.bf16.msra.mxu3 %v2262_v2 }
 0x205   : > { %v1138_v28 = vpack.c.b16 %v1136_v27, %v1135_v58 }
 0x207   : > { %v1140_v29 = vrot.slane %v1138_v28, 5 }
 0x208   : > { %1594 = vmatpush.bf16.msra.mxu3 %v2258_v9 }
 0x209   : > { %v1150_v25 = vrot.slane %v1140_v29, 3 }
 0x20a   : > { %v2403_v31 = vld [vmem:[#allocation2 + $0xc] sm:$0xf0]  ;;  %v1112_v32 = vld [vmem:[#allocation2 + $0x14] sm:$0x7] }
 0x20b   : > { %1388 = vmatmul.bf16.gmra.mxu0 %v1150_v25  ;;  %1426 = vmatmul.bf16.gmra.mxu2 %v1150_v25  ;;  %v1124_v5 = vunpack.c.l.b16 %v1112_v32  ;;  %v2116_v33 = vor.u32 %v2403_v31, %v2115_v30 }
 0x20c   : > { %1595 = vmatpush.bf16.msra.mxu3 %v2254_v15 }
 0x20d   : > { %v1128_v34 = vpack.c.b16 %v1124_v5, %v1124_v5  ;;  %v1147_v35 = vrot.slane %v2116_v33, 3 }
 0x20f   : > { %v1148_v36 = vrot.slane %v1128_v34, 3 }
 0x211   : > { %v1149_v37 = vsel %vm1141_vm4, %v1147_v35, %v1148_v36 }
 0x212   : > { %1369 = vmatmul.bf16.gmra.mxu3 %v1149_v37  ;;  %1407 = vmatmul.bf16.gmra.mxu1 %v1149_v37 }
 0x278   : > { %v1384_v20 = vpop.f32.mrf.mxu0 }
 0x27e   : > { %v1422_v61 = vpop.f32.mrf.mxu2 }
 0x27f   : > { %v1403_v62 = vpop.f32.mrf.mxu1 }
 0x280   : > { %v1404_v1 = vadd.f32 %v1403_v62, %v1193_v57  ;;  %v1386_v31 = vpop.f32.mrf.mxu0 }
 0x282   : > { %v1423_v6 = vadd.f32 %v1422_v61, %v1404_v1 }
 0x284   : > { %v2246_v8 = vmul.f32 -1.442695, %v1423_v6 }
 0x285   : > { %v1365_v13 = vpop.f32.mrf.mxu3 }
 0x286   : > { %2532 = vpow2.f32 %v2246_v8  ;;  %v1424_v10 = vpop.f32.mrf.mxu2  ;;  %v1366_v32 = vadd.f32 %v1365_v13, %v2847_v26 }
 0x287   : > { %v1405_v11 = vpop.f32.mrf.mxu1 }
 0x288   : > { %v1406_v14 = vadd.f32 %v1405_v11, %v1193_v57  ;;  %v1385_v38 = vadd.f32 %v1384_v20, %v1366_v32  ;;  %v1389_v55 = vpop.f32.mrf.mxu0 }
 0x28a   : > { %v1425_v45 = vadd.f32 %v1424_v10, %v1406_v14 }
 0x28c   : > { %v2533_v16 = vpop.eup %2532  ;;  %v2247_v17 = vmul.f32 -1.442695, %v1425_v45 }
 0x28d   : > { %v1448_v18 = vadd.f32 1.0, %v2533_v16  ;;  %v1367_v23 = vpop.f32.mrf.mxu3 }
 0x28e   : > { %2534 = vpow2.f32 %v2247_v17  ;;  %v1427_v59 = vpop.f32.mrf.mxu2  ;;  %v1368_v33 = vadd.f32 %v1367_v23, %v2847_v26 }
 0x28f   : > { %2536 = vrcp.f32 %v1448_v18  ;;  %v1408_v21 = vpop.f32.mrf.mxu1  ;;  %v1463_v50 = vand.u32 2147483648, %v1448_v18  ;;  %vm1457_vm6 = vweird.f32 %v1448_v18  ;;  %v1461_v53 = vand.u32 2147483647, %v1448_v18 }
 0x290   : > { %v1409_v22 = vadd.f32 %v1408_v21, %v1193_v57  ;;  %v1387_v44 = vadd.f32 %v1386_v31, %v1368_v33  ;;  %v1391_v17 = vpop.f32.mrf.mxu0 }
 0x291   : > { %v1464_v61 = vor.u32 1.1754944e-38, %v1463_v50  ;;  %vm1462_vm9 = vcmp.eq.f32.partialorder %v1461_v53, 8.507059e+37  ;;  %v2458_v50 = vld [vmem:[%s2937_s9 + $0x30] sm:$0xff] }
 0x292   : > { %v1428_v24 = vadd.f32 %v1427_v59, %v1409_v22 }
 0x294   : > { %v2535_v19 = vpop.eup %2534  ;;  %v2248_v58 = vmul.f32 -1.442695, %v1428_v24 }
 0x295   : > { %v2537_v27 = vpop.eup %2536  ;;  %v1449_v28 = vadd.f32 1.0, %v2535_v19  ;;  %v1370_v39 = vpop.f32.mrf.mxu3 }
 0x296   : > { %v1453_v29 = vmul.f32 %v2537_v27, %v1448_v18  ;;  %2538 = vpow2.f32 %v2248_v58  ;;  %v1429_v34 = vpop.f32.mrf.mxu2  ;;  %vm1458_vm5 = vweird.f32 %v2537_v27  ;;  %v1371_v12 = vadd.f32 %v1370_v39, %v2847_v26  ;;  %v2449_v39 = vld [vmem:[%s2935_s7 + $0x28] sm:$0xff] }
 0x297   : > { %2540 = vrcp.f32 %v1449_v28  ;;  %v1410_v30 = vpop.f32.mrf.mxu1  ;;  %vm1459_vm7 = vmor %vm1457_vm6, %vm1458_vm5  ;;  %v1478_v54 = vand.u32 2147483648, %v1449_v28  ;;  %v1476_v60 = vand.u32 2147483647, %v1449_v28  ;;  %vm1472_vm10 = vweird.f32 %v1449_v28 }
 0x298   : > { %v1454_v25 = vsub.f32 1.0, %v1453_v29  ;;  %v1411_v5 = vadd.f32 %v1410_v30, %v1193_v57  ;;  %v1390_v18 = vadd.f32 %v1389_v55, %v1371_v12  ;;  %v2455_v55 = vld [vmem:[%s2937_s9 + $0x18] sm:$0xff]  ;;  %vm1800_vm6 = vcmask 15360  }
 0x299   : > { %v1479_v6 = vor.u32 1.1754944e-38, %v1478_v54  ;;  %vm1477_vm12 = vcmp.eq.f32.partialorder %v1476_v60, 8.507059e+37  ;;  %v2456_v54 = vld [vmem:[%s2937_s9 + $0x20] sm:$0xff] }
 0x29a   : > { %v1430_v35 = vadd.f32 %v1429_v34, %v1411_v5  ;;  %v1455_v36 = vmul.f32 %v2537_v27, %v1454_v25 }
 0x29c   : > { %v2539_v37 = vpop.eup %2538  ;;  %v2249_v40 = vmul.f32 -1.442695, %v1430_v35  ;;  %v1456_v48 = vadd.f32 %v2537_v27, %v1455_v36 }
 0x29d   : > { %v2541_v43 = vpop.eup %2540  ;;  %v2854_v46 = vadd.f32 1.0, %v2539_v37  ;;  %v1372_v7 = vpop.f32.mrf.mxu3 }
 0x29e   : > { %v1468_v47 = vmul.f32 %v2541_v43, %v1449_v28  ;;  %2542 = vpow2.f32 %v2249_v40  ;;  %v1460_v56 = vsel %vm1459_vm7, %v2537_v27, %v1456_v48  ;;  %vm1473_vm8 = vweird.f32 %v2541_v43  ;;  %v2448_v40 = vld [vmem:[%s2935_s7 + $0x20] sm:$0xff] }
 0x29f   : > { %2544 = vrcp.f32 %v2854_v46  ;;  %v1465_v2 = vsel %vm1462_vm9, %v1464_v61, %v1460_v56  ;;  %vm1474_vm11 = vmor %vm1472_vm10, %vm1473_vm8  ;;  %v1373_v15 = vadd.f32 %v1372_v7, %v2847_v26  ;;  %v1493_v23 = vand.u32 2147483648, %v2854_v46  ;;  %v2250_v56 = vld [vmem:[%s2934_s6 + $0x2] sm:$0x3] }
 0x2a0   : > { %2546 = vtanh.f32 %v1385_v38  ;;  %v1469_v52 = vsub.f32 1.0, %v1468_v47  ;;  %vm1487_vm14 = vweird.f32 %v2854_v46  ;;  %v1491_v24 = vand.u32 2147483647, %v2854_v46  ;;  %v2450_v38 = vld [vmem:[%s2935_s7 + $0x30] sm:$0xff]  ;;  %v2459_v47 = vld [vmem:[%s2937_s9 + $0x38] sm:$0xff] }
 0x2a1   : > { %2548 = vtanh.f32 %v1387_v44  ;;  %v1392_v59 = vadd.f32 %v1391_v17, %v1373_v15  ;;  %v1494_v29 = vor.u32 1.1754944e-38, %v1493_v23  ;;  %1677 = vmatpush.bf16.msrb.mxu0 %v2450_v38  ;;  %v2445_v44 = vld [vmem:[%s2935_s7 + $0x8] sm:$0xff]  ;;  %1761 = vmatpush.bf16.msrb.mxu1 %v2459_v47  ;;  %v1538_v60 = vperm.slane %v2250_v56, 1  ;;  %v2507_v15 = vld [vmem:[%s2938_s10] ss:$0 sm:$0xff] }
 0x2a2   : > { %v1470_v57 = vmul.f32 %v2541_v43, %v1469_v52  ;;  %vm1492_vm1 = vcmp.eq.f32.partialorder %v1491_v24, 8.507059e+37  ;;  %v2457_v52 = vld [vmem:[%s2937_s9 + $0x28] sm:$0xff]  ;;  %v974_v61 = vperm.slane %v2831_v51, 1 }
 0x2a3   : > { %v2453_v51 = vld [vmem:[%s2937_s9 + $0x8] sm:$0xff] }
 0x2a4   : > { %v2543_v62 = vpop.eup %2542  ;;  %v1471_v63 = vadd.f32 %v2541_v43, %v1470_v57 }
 0x2a5   : > { %v2545_v0 = vpop.eup %2544  ;;  %v1451_v1 = vadd.f32 1.0, %v2543_v62  ;;  %1678 = vmatpush.bf16.msrb.mxu0 %v2449_v39  ;;  %1762 = vmatpush.bf16.msrb.mxu1 %v2458_v50 }
 0x2a6   : > { %v2547_v3 = vpop.eup %2546  ;;  %v1475_v8 = vsel %vm1474_vm11, %v2541_v43, %v1471_v63  ;;  %v1483_v9 = vmul.f32 %v2545_v0, %v2854_v46  ;;  %vm1488_vm13 = vweird.f32 %v2545_v0  ;;  %v2446_v43 = vld [vmem:[%s2935_s7 + $0x10] sm:$0xff]  ;;  %v2444_v46 = vld [vmem:[%s2935_s7] sm:$0xff] }
 0x2a7   : > { %v2549_v10 = vpop.eup %2548  ;;  %2550 = vrcp.f32 %v1451_v1  ;;  %v1480_v11 = vsel %vm1477_vm12, %v1479_v6, %v1475_v8  ;;  %v1512_v42 = vmul.f32 %v2547_v3, %v1465_v2  ;;  %vm1489_vm15 = vmor %vm1487_vm14, %vm1488_vm13  ;;  %v1508_v26 = vand.u32 2147483648, %v1451_v1  ;;  %v2454_v8 = vld [vmem:[%s2937_s9 + $0x10] sm:$0xff] }
 0x2a8   : > { %v1513_v13 = vmul.f32 %v2549_v10, %v1480_v11  ;;  %v1484_v14 = vsub.f32 1.0, %v1483_v9  ;;  %2552 = vtanh.f32 %v1390_v18  ;;  %v1506_v28 = vand.u32 2147483647, %v1451_v1  ;;  %v2506_v9 = vld [vmem:[%s2936_s8] ss:$0 sm:$0xff] }
 0x2a9   : > { %2554 = vtanh.f32 %v1392_v59  ;;  %vm1502_vm2 = vweird.f32 %v1451_v1  ;;  %v1509_v31 = vor.u32 1.1754944e-38, %v1508_v26  ;;  %1679 = vmatpush.bf16.msrb.mxu0 %v2448_v40  ;;  %1763 = vmatpush.bf16.msrb.mxu1 %v2457_v52 }
 0x2aa   : > { %v1516_v45 = vpack.c.bf16 %v1513_v13, %v1512_v42  ;;  %v1485_v16 = vmul.f32 %v2545_v0, %v1484_v14  ;;  %vm1507_vm4 = vcmp.eq.f32.partialorder %v1506_v28, 8.507059e+37 }
 0x2ac   : > { %1596 = vmatmul.bf16.vlgmr.msra.gmra.mxu3 %v1516_v45  ;;  %v1486_v21 = vadd.f32 %v2545_v0, %v1485_v16 }
 0x2ad   : > { %v2551_v20 = vpop.eup %2550  ;;  %1680 = vmatpush.bf16.msrb.mxu0 %v2447_v41  ;;  %1764 = vmatpush.bf16.msrb.mxu1 %v2456_v54 }
 0x2ae   : > { %v1498_v22 = vmul.f32 %v2551_v20, %v1451_v1  ;;  %v1490_v58 = vsel %vm1489_vm15, %v2545_v0, %v1486_v21  ;;  %vm1503_vm0 = vweird.f32 %v2551_v20  ;;  %v2553_v32 = vpop.eup %2552  ;;  %v1087_v0 = vadd.f32 %v2836_v4, %v974_v61  ;;  %v2452_v4 = vld [vmem:[%s2937_s9] sm:$0xff] }
 0x2af   : > { %v1495_v25 = vsel %vm1492_vm1, %v1494_v29, %v1490_v58  ;;  %vm1504_vm3 = vmor %vm1502_vm2, %vm1503_vm0  ;;  %v2555_v33 = vpop.eup %2554  ;;  %v1091_v1 = vadd.f32 %v2842_v49, %v974_v61  ;;  %v1775_v58 = vlaneseq }
 0x2b0   : > { %v1499_v19 = vsub.f32 1.0, %v1498_v22  ;;  %v1514_v35 = vmul.f32 %v2553_v32, %v1495_v25 }
 0x2b1   : > { %1681 = vmatpush.bf16.msrb.mxu0 %v2446_v43  ;;  %1765 = vmatpush.bf16.msrb.mxu1 %v2455_v55  ;;  %v1776_v29 = vand.u32 127, %v1775_v58 }
 0x2b2   : > { %v1500_v27 = vmul.f32 %v2551_v20, %v1499_v19 }
 0x2b3   : > { %vm1777_vm5 = vcmp.ge.s32.totalorder %v1776_v29, 1 }
 0x2b4   : > { %v1501_v30 = vadd.f32 %v2551_v20, %v1500_v27 }
 0x2b5   : > { %1682 = vmatpush.bf16.msrb.mxu0 %v2445_v44  ;;  %1766 = vmatpush.bf16.msrb.mxu1 %v2454_v8 }
 0x2b6   : > { %v1505_v5 = vsel %vm1504_vm3, %v2551_v20, %v1501_v30 }
 0x2b7   : > { %v1510_v34 = vsel %vm1507_vm4, %v1509_v31, %v1505_v5 }
 0x2b8   : > { %v1515_v36 = vmul.f32 %v2555_v33, %v1510_v34 }
 0x2b9   : > { %1683 = vmatpush.bf16.msrb.mxu0 %v2444_v46  ;;  %1767 = vmatpush.bf16.msrb.mxu1 %v2453_v51 }
 0x2ba   : > { %v1517_v37 = vpack.c.bf16 %v1515_v36, %v1514_v35 }
 0x2bc   : > { %1600 = vmatmul.bf16.gmra.mxu3 %v1517_v37 }
 0x2bd   : > { %1768 = vmatpush.bf16.msrb.mxu1 %v2452_v4 }
 0x32f   : > { %v1597_v48 = vpop.f32.mrf.mxu3 }
 0x337   : > { %v1598_v53 = vpop.f32.mrf.mxu3 }
 0x338   : > { %v1599_v62 = vadd.f32 %v1598_v53, %v1538_v60 }
 0x33a   : > { %v1605_v6 = vadd.f32 %v1599_v62, %v1087_v0 }
 0x33f   : > { %v1601_v57 = vpop.f32.mrf.mxu3 }
 0x347   : > { %v1602_v63 = vpop.f32.mrf.mxu3 }
 0x348   : > { %v1603_v2 = vadd.f32 %v1602_v63, %v1538_v60 }
 0x34a   : > { %v1606_v3 = vadd.f32 %v1603_v2, %v1091_v1 }
 0x34c   : > { %v1607_v7 = vpack.c.bf16 %v1606_v3, %v1605_v6 }
 0x34e   : > { %1684 = vmatmul.bf16.vlgmr.msrb.gmra.mxu0 %v1607_v7 }
 0x3cb   : > { %v1685_v49 = vpop.f32.mrf.mxu0 }
 0x3cc   : > { %v1686_v10 = vadd.f32 %v2506_v9, %v1685_v49 }
 0x3ce   : > { %v1690_v42 = vmax.f32 %v1686_v10, 0.0 }
 0x3d3   : > { %v1687_v11 = vpop.f32.mrf.mxu0 }
 0x3d4   : > { %v1688_v12 = vadd.f32 %v2506_v9, %v1687_v11 }
 0x3d6   : > { %v1691_v13 = vmax.f32 %v1688_v12, 0.0 }
 0x3d8   : > { %v1692_v14 = vpack.c.bf16 %v1691_v13, %v1690_v42 }
 0x3da   : > { %1769 = vmatmul.bf16.vlgmr.msrb.gmra.mxu1 %v1692_v14 }
 0x457   : > { %v1770_v45 = vpop.f32.mrf.mxu1 }
 0x458   : > { %v1771_v16 = vadd.f32 %v2507_v15, %v1770_v45 }
 0x45a   : > { %v1780_v17 = vand.u32 2147483647, %v1771_v16  ;;  %v1778_v25 = vmax.f32 %v1771_v16, 0.0 }
 0x45c   : > { %v1782_v18 = vsub.f32 0.0, %v1780_v17 }
 0x45e   : > { %v1784_v20 = vmul.f32 1.442695, %v1782_v18 }
 0x45f   : > { %v1772_v59 = vpop.f32.mrf.mxu1 }
 0x460   : > { %2556 = vpow2.f32 %v1784_v20  ;;  %v1773_v21 = vadd.f32 %v2507_v15, %v1772_v59 }
 0x462   : > { %v1781_v22 = vand.u32 2147483647, %v1773_v21  ;;  %v1779_v35 = vmax.f32 %v1773_v21, 0.0 }
 0x464   : > { %v1783_v23 = vsub.f32 0.0, %v1781_v22 }
 0x466   : > { %v2557_v24 = vpop.eup %2556  ;;  %v1786_v19 = vmul.f32 1.442695, %v1783_v23 }
 0x467   : > { %v1788_v26 = vadd.f32 1.0, %v2557_v24 }
 0x468   : > { %2558 = vpow2.f32 %v1786_v19 }
 0x469   : > { %2560 = vlog2.f32 %v1788_v26 }
 0x46e   : > { %v2559_v27 = vpop.eup %2558 }
 0x46f   : > { %v2561_v28 = vpop.eup %2560  ;;  %v1789_v30 = vadd.f32 1.0, %v2559_v27 }
 0x470   : > { %v1791_v31 = vmul.f32 0.6931472, %v2561_v28 }
 0x471   : > { %2562 = vlog2.f32 %v1789_v30 }
 0x472   : > { %v1794_v32 = vadd.f32 %v1791_v31, %v1778_v25 }
 0x474   : > { %v1796_v5 = vadd.f32 1e-06, %v1794_v32 }
 0x476   : > { %v1798_v33 = vsel %vm1777_vm5, %v1796_v5, %v1771_v16 }
 0x477   : > { %v2563_v34 = vpop.eup %2562  ;;  %1801 = vst.msk [vmem:[%s425_s21] sm:$0xff] %vm1800_vm6, %v1798_v33 }
 0x478   : > { %v1793_v36 = vmul.f32 0.6931472, %v2563_v34 }
 0x47a   : > { %v1795_v37 = vadd.f32 %v1793_v36, %v1779_v35 }
 0x47c   : > { %v1797_v38 = vadd.f32 1e-06, %v1795_v37 }
 0x47e   : > { %v1799_v39 = vsel %vm1777_vm5, %v1797_v38, %v1773_v21 }
 0x47f   : > { %1802 = vst.msk [vmem:[%s425_s21 + $0x8] sm:$0xff] %vm1800_vm6, %v1799_v39 }
 0x480 PF: > { %s23_s17 = sadd.s32 1, %s2638_s17  }
 0x481   : > { %p20_p7 = scmp.ge.s32.totalorder %s23_s17, 4  }
 0x483   :  { %22 = sbr.rel (!%p20_p7) target bundleno = 2 (0x2), region = 107 }
 0x488   :  { %1825 = vsyncpa [#allocation4], 1 }
 0x489   :  { %1827 = vsyncpa [#allocation4 + $0x1], 1 }
 0x48a   :  { %1828 = vsyncpa [#allocation6], 1 }

</bundles_post_ra>
